<compile_context>
chip_gen: v5e
topology: v5e:2x2
jax: 0.10.0
libtpu: 0.0.40
codegen_flags: <defaults>
</compile_context>

<pallas_src>
import functools
import math

import jax
import jax.numpy as jnp
from jax.experimental import pallas as pl
from jax.experimental.pallas import tpu as pltpu

MODEL_DIM = 32           # real feature dim F
NUM_HEADS = 4
FF_DIM = 64              # real FF hidden dim
NUM_LAYERS = 2
CONV_K = 3
LN_EPS = 1e-5
BN_EPS = 1e-5
NEG_INF = -1e30

FP = 128                 # lane-padded feature / FF dim
DH = MODEL_DIM // NUM_HEADS   # 8

# ---- per-layer packed weight slab layout -----------------------------------
N_MAT = 11
(M_FF1_W1, M_FF1_W2, M_ATT_WQ, M_ATT_WK, M_ATT_WV, M_ATT_WO,
 M_CV_WA, M_CV_WG, M_CV_PW2, M_FF2_W1, M_FF2_W2) = range(N_MAT)

N_VEC = 32               # 27 used, padded to a sublane multiple
(V_FF1_LN_G, V_FF1_LN_B, V_FF1_B1, V_FF1_B2,
 V_ATT_LN_G, V_ATT_LN_B, V_ATT_BQ, V_ATT_BK, V_ATT_BV, V_ATT_BO,
 V_CV_LN_G, V_CV_LN_B, V_CV_BA, V_CV_BG, V_CV_DWB, V_CV_BNS, V_CV_BNSH,
 V_CV_PW2B,
 V_FF2_LN_G, V_FF2_LN_B, V_FF2_B1, V_FF2_B2,
 V_FIN_LN_G, V_FIN_LN_B,
 V_CV_DW0, V_CV_DW1, V_CV_DW2) = range(27)


def _round_up(x, m):
    return ((x + m - 1) // m) * m


# -----------------------------------------------------------------------------
# Fused kernel: one (batch-block, layer) grid step of the whole encoder.
# -----------------------------------------------------------------------------
def _conformer_kernel(tw_ref, data_ref, bias_ref, seg_ref, fw_ref, fb_ref,
                      mats_ref, vecs_ref, acc_ref, x_ref, *, Bb, Tp, T):
    l = pl.program_id(1)
    inv_f = 1.0 / float(MODEL_DIM)
    scale = 1.0 / math.sqrt(DH)

    def V(i):                                   # [1, FP] f32 weight vector
        return vecs_ref[i]

    def mm(a, i):                               # bf16 MXU matmul, f32 accum
        return jnp.dot(a.astype(jnp.bfloat16), mats_ref[i],
                       preferred_element_type=jnp.float32)

    # ---- frontend + transparent-accumulator init (layer 0 only) ------------
    # TODO(synk): the real frontend is config-supplied (e.g. VGG conv
    # subsampling); here a per-frame linear frontend (no downsampling).
    @pl.when(l == 0)
    def _():
        x0 = jnp.dot(data_ref[...].astype(jnp.bfloat16), fw_ref[...],
                     preferred_element_type=jnp.float32) + fb_ref[...]
        x_ref[...] = x0
        acc_ref[...] = tw_ref[0] * x0

    x = x_ref[...]                              # [Bb*Tp, FP], pad lanes == 0

    def layer_norm(v, gi, bi):
        # padding lanes of v are 0 -> plain sum / F and sumsq / F are exact;
        # gamma/beta have zero padding lanes so the output pad lanes stay 0.
        mean = jnp.sum(v, axis=-1, keepdims=True) * inv_f
        var = jnp.sum(v * v, axis=-1, keepdims=True) * inv_f - mean * mean
        return (v - mean) * jax.lax.rsqrt(var + LN_EPS) * V(gi) + V(bi)

    def ffn(v, gi, bi, w1i, b1i, w2i, b2i):
        y = layer_norm(v, gi, bi)
        h = mm(y, w1i) + V(b1i)
        h = h * jax.nn.sigmoid(h)               # SiLU
        return mm(h, w2i) + V(b2i)

    # ---- feed-forward 1 (x 0.5) --------------------------------------------
    x = x + 0.5 * ffn(x, V_FF1_LN_G, V_FF1_LN_B, M_FF1_W1, V_FF1_B1,
                      M_FF1_W2, V_FF1_B2)

    # ---- multi-head self attention (heads packed along lanes) --------------
    y = layer_norm(x, V_ATT_LN_G, V_ATT_LN_B)
    q = mm(y, M_ATT_WQ) + V(V_ATT_BQ)
    k = mm(y, M_ATT_WK) + V(V_ATT_BK)
    v = mm(y, M_ATT_WV) + V(V_ATT_BV)
    seg = seg_ref[...]                          # [NH*Tp, FP] head-block mask
    seg_b = seg.astype(jnp.bfloat16)

    att_rows = []
    for i in range(Bb):                         # per-sequence attention
        qi = q[i * Tp:(i + 1) * Tp, :]
        ki = k[i * Tp:(i + 1) * Tp, :]
        vi = v[i * Tp:(i + 1) * Tp, :]
        # head-blocked K / V: sublane block h only keeps head h's lanes
        k4 = jnp.concatenate([ki] * NUM_HEADS, axis=0) * seg   # [NH*Tp, FP]
        v4 = jnp.concatenate([vi] * NUM_HEADS, axis=0) * seg
        # one MXU pass -> all head score matrices side by side [Tp, NH*Tp]
        s = jax.lax.dot_general(
            qi.astype(jnp.bfloat16), k4.astype(jnp.bfloat16),
            (((1,), (1,)), ((), ())), preferred_element_type=jnp.float32)
        s = s * scale + bias_ref[i]             # key-padding bias (per head)
        s = s - jnp.max(s, axis=-1, keepdims=True)
        p = jnp.exp(s).astype(jnp.bfloat16)
        # p @ seg broadcasts each head's softmax denominator to its lanes,
        # p @ v4 gives the concatenated (unnormalized) head outputs.
        den = jnp.dot(p, seg_b, preferred_element_type=jnp.float32)
        num = jnp.dot(p, v4.astype(jnp.bfloat16),
                      preferred_element_type=jnp.float32)
        att_rows.append(num / den)
    att = jnp.concatenate(att_rows, axis=0)     # [Bb*Tp, FP]
    x = x + mm(att, M_ATT_WO) + V(V_ATT_BO)

    # ---- convolution module -------------------------------------------------
    y = layer_norm(x, V_CV_LN_G, V_CV_LN_B)
    a = mm(y, M_CV_WA) + V(V_CV_BA)
    g = mm(y, M_CV_WG) + V(V_CV_BG)
    y = a * jax.nn.sigmoid(g)                   # GLU

    # depthwise conv over time (K=3, 'same' zero padding) via XLU sublane
    # rolls; frames >= T are zeroed so the window matches torch zero padding
    # and padded frames never leak into valid frames.
    t_idx = jax.lax.broadcasted_iota(jnp.int32, (Tp, FP), 0)
    valid = (t_idx < T).astype(jnp.float32)
    prev_ok = (t_idx >= 1).astype(jnp.float32)
    next_ok = (t_idx < Tp - 1).astype(jnp.float32)
    w0, w1, w2 = V(V_CV_DW0), V(V_CV_DW1), V(V_CV_DW2)
    conv_rows = []
    for i in range(Bb):                         # per-sequence time shifts
        yi = y[i * Tp:(i + 1) * Tp, :] * valid
        y_prev = pltpu.roll(yi, 1, axis=0) * prev_ok
        y_next = pltpu.roll(yi, Tp - 1, axis=0) * next_ok
        conv_rows.append(y_prev * w0 + yi * w1 + y_next * w2)
    yc = jnp.concatenate(conv_rows, axis=0) + V(V_CV_DWB)
    yc = yc * V(V_CV_BNS) + V(V_CV_BNSH)        # eval-mode BatchNorm1d
    yc = yc * jax.nn.sigmoid(yc)                # SiLU
    x = x + mm(yc, M_CV_PW2) + V(V_CV_PW2B)

    # ---- feed-forward 2 (x 0.5) + final layer norm --------------------------
    x = x + 0.5 * ffn(x, V_FF2_LN_G, V_FF2_LN_B, M_FF2_W1, V_FF2_B1,
                      M_FF2_W2, V_FF2_B2)
    x = layer_norm(x, V_FIN_LN_G, V_FIN_LN_B)

    x_ref[...] = x                                       # carried layer stream
    acc_ref[...] = acc_ref[...] + tw_ref[l + 1] * x      # transparent sum


# -----------------------------------------------------------------------------
# Wrapper: one pallas_call for the whole forward.
# -----------------------------------------------------------------------------
def conformer_forward(params, data, sequence_mask):
    """data: [B, T', F_in]; sequence_mask: [B, T'] (1.0 valid, 0.0 padding)."""
    B, T, f_in = data.shape
    Tp = _round_up(T, 8)
    fin_p = params["frontend_w"].shape[0]

    data_p = jnp.pad(data.astype(jnp.float32),
                     ((0, 0), (0, Tp - T), (0, fin_p - f_in)))
    data_flat = data_p.reshape(B * Tp, fin_p)

    mask_p = jnp.pad(sequence_mask.astype(jnp.float32), ((0, 0), (0, Tp - T)))
    key_bias = ((1.0 - mask_p) * NEG_INF).reshape(B, 1, Tp)
    key_bias = jnp.tile(key_bias, (1, 1, NUM_HEADS))     # [B, 1, NH*Tp]

    # head-block segment mask: seg[h*Tp + j, d] = 1 iff lane d belongs to head
    # h; head-0 rows also cover the padding lanes so the broadcast softmax
    # denominator is never zero there.
    seg = jnp.zeros((NUM_HEADS * Tp, FP), jnp.float32)
    for h in range(NUM_HEADS):
        seg = seg.at[h * Tp:(h + 1) * Tp, h * DH:(h + 1) * DH].set(1.0)
    seg = seg.at[0:Tp, MODEL_DIM:].set(1.0)

    # batch block per grid step: fatten the matmul M dimension (Bb*Tp rows).
    Bb = 1
    for d in range(1, B + 1):
        if B % d == 0 and d <= 8 and d * Tp <= 512:
            Bb = d
    nb = B // Bb

    trans_w = jax.nn.softmax(params["transparent_scales"])

    # TODO(synk): for long sequences (Tp ~ 1-2k) switch attention to a
    # flash-style key-tiled online softmax to stay inside v7x's 64 MiB VMEM.
    acc = pl.pallas_call(
        functools.partial(_conformer_kernel, Bb=Bb, Tp=Tp, T=T),
        out_shape=jax.ShapeDtypeStruct((B * Tp, FP), jnp.float32),
        grid=(nb, NUM_LAYERS),
        in_specs=[
            pl.BlockSpec(memory_space=pltpu.MemorySpace.SMEM),          # scales
            pl.BlockSpec((Bb * Tp, fin_p), lambda b, l: (b, 0)),        # data
            pl.BlockSpec((Bb, 1, NUM_HEADS * Tp), lambda b, l: (b, 0, 0)),
            pl.BlockSpec((NUM_HEADS * Tp, FP), lambda b, l: (0, 0)),    # seg
            pl.BlockSpec((fin_p, FP), lambda b, l: (0, 0)),             # fw
            pl.BlockSpec((1, FP), lambda b, l: (0, 0)),                 # fb
            pl.BlockSpec((None, N_MAT, FP, FP), lambda b, l: (l, 0, 0, 0)),
            pl.BlockSpec((None, N_VEC, 1, FP), lambda b, l: (l, 0, 0, 0)),
        ],
        out_specs=pl.BlockSpec((Bb * Tp, FP), lambda b, l: (b, 0)),
        scratch_shapes=[pltpu.VMEM((Bb * Tp, FP), jnp.float32)],
        compiler_params=pltpu.CompilerParams(
            dimension_semantics=("parallel", "arbitrary"),
            vmem_limit_bytes=32 * 1024 * 1024),
    )(trans_w, data_flat, key_bias, seg,
      params["frontend_w"], params["frontend_b"],
      params["mats"], params["vecs"])

    final = acc.reshape(B, Tp, FP)[:, :T, :MODEL_DIM]     # drop padding
    return final, sequence_mask


# -----------------------------------------------------------------------------
# Parameters: deterministic natural-shape init + one-time packing into slabs.
# -----------------------------------------------------------------------------
def init_params(key, f_in):
    keys = iter(jax.random.split(key, 16 + NUM_LAYERS * 64))

    def nrm(shape, scale=0.05):
        return (scale * jax.random.normal(next(keys), shape)).astype(jnp.float32)

    F, FF = MODEL_DIM, FF_DIM
    ones = lambda: jnp.ones((F,), jnp.float32)
    zeros = lambda: jnp.zeros((F,), jnp.float32)

    def ff_params():
        return {"ln_g": ones(), "ln_b": zeros(),
                "w1": nrm((F, FF)), "b1": nrm((FF,)),
                "w2": nrm((FF, F)), "b2": nrm((F,))}

    def mhsa_params():
        return {"ln_g": ones(), "ln_b": zeros(),
                "in_w": nrm((F, 3 * F)), "in_b": nrm((3 * F,)),
                "out_w": nrm((F, F)), "out_b": nrm((F,))}

    def conv_params():
        gamma, beta = ones(), zeros()
        rmean, rvar = zeros(), ones()
        scale = gamma / jnp.sqrt(rvar + BN_EPS)
        shift = beta - rmean * scale
        return {"ln_g": ones(), "ln_b": zeros(),
                "pw1_w": nrm((F, 2 * F)), "pw1_b": nrm((2 * F,)),
                "dw_w": nrm((CONV_K, F)), "dw_b": nrm((F,)),
                "bn_scale": scale, "bn_shift": shift,
                "pw2_w": nrm((F, F)), "pw2_b": nrm((F,))}

    blocks = []
    for _ in range(NUM_LAYERS):
        blocks.append({"ff1": ff_params(), "mhsa": mhsa_params(),
                       "conv": conv_params(), "ff2": ff_params(),
                       "final_ln_g": ones(), "final_ln_b": zeros()})

    return {
        "frontend": {"w": nrm((f_in, F)), "b": nrm((F,))},
        "blocks": blocks,
        # torch.nn.init.constant_(transparent_scales, 1 / (num_layers + 1))
        "transparent_scales": jnp.full((NUM_LAYERS + 1,),
                                       1.0 / (NUM_LAYERS + 1), jnp.float32),
    }


def prepare_params(p):
    """Pack natural-shape weights into lane-dense per-layer slabs:
    one bf16 [L, N_MAT, 128, 128] matmul slab and one f32 [L, N_VEC, 1, 128]
    vector slab (feature dims zero-padded 32/64 -> 128 once on the host)."""
    F = MODEL_DIM

    def vec(v):
        v = jnp.asarray(v, jnp.float32)
        return jnp.pad(v, (0, FP - v.shape[0]))

    def mat(w):
        w = jnp.asarray(w, jnp.float32)
        return jnp.pad(w, ((0, FP - w.shape[0]), (0, FP - w.shape[1])))

    mats_l, vecs_l = [], []
    for bp in p["blocks"]:
        ff1, mh, cv, ff2 = bp["ff1"], bp["mhsa"], bp["conv"], bp["ff2"]
        wq, wk, wv = (mh["in_w"][:, :F], mh["in_w"][:, F:2 * F],
                      mh["in_w"][:, 2 * F:])
        bq, bk, bv = mh["in_b"][:F], mh["in_b"][F:2 * F], mh["in_b"][2 * F:]
        wa, wg = cv["pw1_w"][:, :F], cv["pw1_w"][:, F:]
        ba, bg = cv["pw1_b"][:F], cv["pw1_b"][F:]

        mats_l.append(jnp.stack([
            mat(ff1["w1"]), mat(ff1["w2"]),
            mat(wq), mat(wk), mat(wv), mat(mh["out_w"]),
            mat(wa), mat(wg), mat(cv["pw2_w"]),
            mat(ff2["w1"]), mat(ff2["w2"])]))

        vecs = jnp.stack([
            vec(ff1["ln_g"]), vec(ff1["ln_b"]), vec(ff1["b1"]), vec(ff1["b2"]),
            vec(mh["ln_g"]), vec(mh["ln_b"]), vec(bq), vec(bk), vec(bv),
            vec(mh["out_b"]),
            vec(cv["ln_g"]), vec(cv["ln_b"]), vec(ba), vec(bg),
            vec(cv["dw_b"]), vec(cv["bn_scale"]), vec(cv["bn_shift"]),
            vec(cv["pw2_b"]),
            vec(ff2["ln_g"]), vec(ff2["ln_b"]), vec(ff2["b1"]), vec(ff2["b2"]),
            vec(bp["final_ln_g"]), vec(bp["final_ln_b"]),
            vec(cv["dw_w"][0]), vec(cv["dw_w"][1]), vec(cv["dw_w"][2])])
        vecs_l.append(jnp.pad(vecs, ((0, N_VEC - vecs.shape[0]), (0, 0))))

    fw = jnp.asarray(p["frontend"]["w"], jnp.float32)
    fin_p = _round_up(fw.shape[0], FP)
    fw_p = jnp.pad(fw, ((0, fin_p - fw.shape[0]), (0, FP - fw.shape[1])))

    return {
        "frontend_w": fw_p.astype(jnp.bfloat16),
        "frontend_b": vec(p["frontend"]["b"]).reshape(1, FP),
        "mats": jnp.stack(mats_l).astype(jnp.bfloat16),
        "vecs": jnp.stack(vecs_l).reshape(NUM_LAYERS, N_VEC, 1, FP),
        "transparent_scales": p["transparent_scales"],
    }


if __name__ == "__main__":
    B, T, F_IN = 2, 8, 50
    key = jax.random.PRNGKey(0)
    kp, kd = jax.random.split(key)
    params = prepare_params(init_params(kp, F_IN))
    data = jax.random.normal(kd, (B, T, F_IN), jnp.float32)
    seq_mask = jnp.ones((B, T), jnp.float32).at[1, 6:].set(0.0)  # 2nd seq padded

    out, out_mask = jax.jit(conformer_forward)(params, data, seq_mask)
    jax.block_until_ready(out)
    assert out.shape == (B, T, MODEL_DIM) and out_mask.shape == (B, T)
    assert bool(jnp.all(jnp.isfinite(out)))
    print("KERNEL_OK")
</pallas_src>

<mosaic_0001>
module attributes {stable_mosaic.version = 11 : i64} {
  func.func @_conformer_kernel(%arg0: i32, %arg1: i32, %arg2: memref<3xf32, #tpu.memory_space<smem>>, %arg3: memref<16x128xf32, #tpu.memory_space<vmem>>, %arg4: memref<2x1x32xf32, #tpu.memory_space<vmem>>, %arg5: memref<32x128xf32, #tpu.memory_space<vmem>>, %arg6: memref<128x128xbf16, #tpu.memory_space<vmem>>, %arg7: memref<1x128xf32, #tpu.memory_space<vmem>>, %arg8: memref<1x11x128x128xbf16, #tpu.memory_space<vmem>>, %arg9: memref<1x32x1x128xf32, #tpu.memory_space<vmem>>, %arg10: memref<16x128xf32, #tpu.memory_space<vmem>>, %arg11: memref<16x128xf32, #tpu.memory_space<vmem>>) attributes {dimension_semantics = [#tpu.dimension_semantics<parallel>, #tpu.dimension_semantics<arbitrary>], iteration_bounds = array<i64: 1, 2>, scalar_prefetch = 0 : i64, scratch_operands = 1 : i64, tpu.core_type = #tpu.core_type<tc>, window_params = [{transform_indices = @transform_0, window_bounds = array<i64: 3>}, {transform_indices = @transform_1, window_bounds = array<i64: 16, 128>}, {transform_indices = @transform_2, window_bounds = array<i64: 2, 1, 32>}, {pipeline_mode = #tpu.pipeline_mode<synchronous>, transform_indices = @transform_3, window_bounds = array<i64: 32, 128>}, {pipeline_mode = #tpu.pipeline_mode<synchronous>, transform_indices = @transform_4, window_bounds = array<i64: 128, 128>}, {pipeline_mode = #tpu.pipeline_mode<synchronous>, transform_indices = @transform_5, window_bounds = array<i64: 1, 128>}, {transform_indices = @transform_6, window_bounds = array<i64: 1, 11, 128, 128>}, {transform_indices = @transform_7, window_bounds = array<i64: 1, 32, 1, 128>}, {transform_indices = @transform_8, window_bounds = array<i64: 16, 128>}]} {
    %c0_i32 = arith.constant 0 : i32
    %0 = arith.cmpi eq, %arg1, %c0_i32 : i32
    %1 = arith.extui %0 : i1 to i32
    %c0_i32_0 = arith.constant 0 : i32
    %2 = arith.cmpi ne, %1, %c0_i32_0 : i32
    scf.if %2 {
      %c0_198 = arith.constant 0 : index
      %c0_199 = arith.constant 0 : index
      %378 = vector.load %arg3[%c0_198, %c0_199] : memref<16x128xf32, #tpu.memory_space<vmem>>, vector<16x128xf32>
      %379 = arith.truncf %378 : vector<16x128xf32> to vector<16x128xbf16>
      %c0_200 = arith.constant 0 : index
      %c0_201 = arith.constant 0 : index
      %380 = vector.load %arg6[%c0_200, %c0_201] : memref<128x128xbf16, #tpu.memory_space<vmem>>, vector<128x128xbf16>
      %cst_202 = arith.constant dense<0.000000e+00> : vector<16x128xf32>
      %381 = tpu.matmul %379, %380, %cst_202 {dimension_numbers = #tpu.dot_dimension_numbers<[1], [0], [0], [1], [0, 0, 1, 1], [], []>} : vector<16x128xbf16>, vector<128x128xbf16>, vector<16x128xf32> -> vector<16x128xf32>
      %c0_203 = arith.constant 0 : index
      %c0_204 = arith.constant 0 : index
      %382 = vector.load %arg7[%c0_203, %c0_204] : memref<1x128xf32, #tpu.memory_space<vmem>>, vector<1x128xf32>
      %383 = vector.broadcast %382 : vector<1x128xf32> to vector<16x128xf32>
      %384 = arith.addf %381, %383 : vector<16x128xf32>
      %c0_205 = arith.constant 0 : index
      %c0_206 = arith.constant 0 : index
      %385 = vector.load %arg11[%c0_205, %c0_206] : memref<16x128xf32, #tpu.memory_space<vmem>>, vector<16x128xf32>
      tpu.vector_store %arg11[%c0_205, %c0_206], %384 {strides = array<i32>} : memref<16x128xf32, #tpu.memory_space<vmem>>, vector<16x128xf32>,
      %c0_207 = arith.constant 0 : index
      %386 = memref.load %arg2[%c0_207] : memref<3xf32, #tpu.memory_space<smem>>
      %387 = vector.broadcast %386 : f32 to vector<16x128xf32>
      %388 = arith.mulf %387, %384 : vector<16x128xf32>
      %c0_208 = arith.constant 0 : index
      %c0_209 = arith.constant 0 : index
      %389 = vector.load %arg10[%c0_208, %c0_209] : memref<16x128xf32, #tpu.memory_space<vmem>>, vector<16x128xf32>
      tpu.vector_store %arg10[%c0_208, %c0_209], %388 {strides = array<i32>} : memref<16x128xf32, #tpu.memory_space<vmem>>, vector<16x128xf32>,
    } else {
    }
    %c0 = arith.constant 0 : index
    %c0_1 = arith.constant 0 : index
    %3 = vector.load %arg11[%c0, %c0_1] : memref<16x128xf32, #tpu.memory_space<vmem>>, vector<16x128xf32>
    %cst = arith.constant dense<0.000000e+00> : vector<16xf32>
    %4 = vector.multi_reduction <add>, %3, %cst [1] : vector<16x128xf32> to vector<16xf32>
    %5 = vector.shape_cast %4 : vector<16xf32> to vector<16x1xf32>
    %cst_2 = arith.constant 3.125000e-02 : f32
    %6 = vector.broadcast %cst_2 : f32 to vector<16x1xf32>
    %7 = arith.mulf %5, %6 : vector<16x1xf32>
    %8 = arith.mulf %3, %3 : vector<16x128xf32>
    %cst_3 = arith.constant dense<0.000000e+00> : vector<16xf32>
    %9 = vector.multi_reduction <add>, %8, %cst_3 [1] : vector<16x128xf32> to vector<16xf32>
    %10 = vector.shape_cast %9 : vector<16xf32> to vector<16x1xf32>
    %cst_4 = arith.constant 3.125000e-02 : f32
    %11 = vector.broadcast %cst_4 : f32 to vector<16x1xf32>
    %12 = arith.mulf %10, %11 : vector<16x1xf32>
    %13 = arith.mulf %7, %7 : vector<16x1xf32>
    %14 = arith.subf %12, %13 : vector<16x1xf32>
    %15 = vector.broadcast %7 : vector<16x1xf32> to vector<16x128xf32>
    %16 = arith.subf %3, %15 : vector<16x128xf32>
    %cst_5 = arith.constant 9.99999974E-6 : f32
    %17 = vector.broadcast %cst_5 : f32 to vector<16x1xf32>
    %18 = arith.addf %14, %17 : vector<16x1xf32>
    %19 = math.rsqrt %18 : vector<16x1xf32>
    %20 = vector.broadcast %19 : vector<16x1xf32> to vector<16x128xf32>
    %21 = arith.mulf %16, %20 : vector<16x128xf32>
    %c0_6 = arith.constant 0 : index
    %c0_7 = arith.constant 0 : index
    %c0_8 = arith.constant 0 : index
    %c0_9 = arith.constant 0 : index
    %22 = vector.load %arg9[%c0_6, %c0_7, %c0_8, %c0_9] : memref<1x32x1x128xf32, #tpu.memory_space<vmem>>, vector<1x1x1x128xf32>
    %23 = vector.shape_cast %22 : vector<1x1x1x128xf32> to vector<1x128xf32>
    %24 = vector.broadcast %23 : vector<1x128xf32> to vector<16x128xf32>
    %25 = arith.mulf %21, %24 : vector<16x128xf32>
    %c0_10 = arith.constant 0 : index
    %c1 = arith.constant 1 : index
    %c0_11 = arith.constant 0 : index
    %c0_12 = arith.constant 0 : index
    %26 = vector.load %arg9[%c0_10, %c1, %c0_11, %c0_12] : memref<1x32x1x128xf32, #tpu.memory_space<vmem>>, vector<1x1x1x128xf32>
    %27 = vector.shape_cast %26 : vector<1x1x1x128xf32> to vector<1x128xf32>
    %28 = vector.broadcast %27 : vector<1x128xf32> to vector<16x128xf32>
    %29 = arith.addf %25, %28 : vector<16x128xf32>
    %30 = arith.truncf %29 : vector<16x128xf32> to vector<16x128xbf16>
    %c0_13 = arith.constant 0 : index
    %c0_14 = arith.constant 0 : index
    %c0_15 = arith.constant 0 : index
    %c0_16 = arith.constant 0 : index
    %31 = vector.load %arg8[%c0_13, %c0_14, %c0_15, %c0_16] : memref<1x11x128x128xbf16, #tpu.memory_space<vmem>>, vector<1x1x128x128xbf16>
    %32 = vector.shape_cast %31 : vector<1x1x128x128xbf16> to vector<128x128xbf16>
    %cst_17 = arith.constant dense<0.000000e+00> : vector<16x128xf32>
    %33 = tpu.matmul %30, %32, %cst_17 {dimension_numbers = #tpu.dot_dimension_numbers<[1], [0], [0], [1], [0, 0, 1, 1], [], []>} : vector<16x128xbf16>, vector<128x128xbf16>, vector<16x128xf32> -> vector<16x128xf32>
    %c0_18 = arith.constant 0 : index
    %c2 = arith.constant 2 : index
    %c0_19 = arith.constant 0 : index
    %c0_20 = arith.constant 0 : index
    %34 = vector.load %arg9[%c0_18, %c2, %c0_19, %c0_20] : memref<1x32x1x128xf32, #tpu.memory_space<vmem>>, vector<1x1x1x128xf32>
    %35 = vector.shape_cast %34 : vector<1x1x1x128xf32> to vector<1x128xf32>
    %36 = vector.broadcast %35 : vector<1x128xf32> to vector<16x128xf32>
    %37 = arith.addf %33, %36 : vector<16x128xf32>
    %38 = arith.negf %37 : vector<16x128xf32>
    %39 = math.exp %38 : vector<16x128xf32>
    %cst_21 = arith.constant 1.000000e+00 : f32
    %40 = vector.broadcast %cst_21 : f32 to vector<16x128xf32>
    %41 = arith.addf %40, %39 : vector<16x128xf32>
    %42 = arith.divf %40, %41 : vector<16x128xf32>
    %43 = arith.mulf %37, %42 : vector<16x128xf32>
    %44 = arith.truncf %43 : vector<16x128xf32> to vector<16x128xbf16>
    %c0_22 = arith.constant 0 : index
    %c1_23 = arith.constant 1 : index
    %c0_24 = arith.constant 0 : index
    %c0_25 = arith.constant 0 : index
    %45 = vector.load %arg8[%c0_22, %c1_23, %c0_24, %c0_25] : memref<1x11x128x128xbf16, #tpu.memory_space<vmem>>, vector<1x1x128x128xbf16>
    %46 = vector.shape_cast %45 : vector<1x1x128x128xbf16> to vector<128x128xbf16>
    %cst_26 = arith.constant dense<0.000000e+00> : vector<16x128xf32>
    %47 = tpu.matmul %44, %46, %cst_26 {dimension_numbers = #tpu.dot_dimension_numbers<[1], [0], [0], [1], [0, 0, 1, 1], [], []>} : vector<16x128xbf16>, vector<128x128xbf16>, vector<16x128xf32> -> vector<16x128xf32>
    %c0_27 = arith.constant 0 : index
    %c3 = arith.constant 3 : index
    %c0_28 = arith.constant 0 : index
    %c0_29 = arith.constant 0 : index
    %48 = vector.load %arg9[%c0_27, %c3, %c0_28, %c0_29] : memref<1x32x1x128xf32, #tpu.memory_space<vmem>>, vector<1x1x1x128xf32>
    %49 = vector.shape_cast %48 : vector<1x1x1x128xf32> to vector<1x128xf32>
    %50 = vector.broadcast %49 : vector<1x128xf32> to vector<16x128xf32>
    %51 = arith.addf %47, %50 : vector<16x128xf32>
    %cst_30 = arith.constant 5.000000e-01 : f32
    %52 = vector.broadcast %cst_30 : f32 to vector<16x128xf32>
    %53 = arith.mulf %52, %51 : vector<16x128xf32>
    %54 = arith.addf %3, %53 : vector<16x128xf32>
    %cst_31 = arith.constant dense<0.000000e+00> : vector<16xf32>
    %55 = vector.multi_reduction <add>, %54, %cst_31 [1] : vector<16x128xf32> to vector<16xf32>
    %56 = vector.shape_cast %55 : vector<16xf32> to vector<16x1xf32>
    %cst_32 = arith.constant 3.125000e-02 : f32
    %57 = vector.broadcast %cst_32 : f32 to vector<16x1xf32>
    %58 = arith.mulf %56, %57 : vector<16x1xf32>
    %59 = arith.mulf %54, %54 : vector<16x128xf32>
    %cst_33 = arith.constant dense<0.000000e+00> : vector<16xf32>
    %60 = vector.multi_reduction <add>, %59, %cst_33 [1] : vector<16x128xf32> to vector<16xf32>
    %61 = vector.shape_cast %60 : vector<16xf32> to vector<16x1xf32>
    %cst_34 = arith.constant 3.125000e-02 : f32
    %62 = vector.broadcast %cst_34 : f32 to vector<16x1xf32>
    %63 = arith.mulf %61, %62 : vector<16x1xf32>
    %64 = arith.mulf %58, %58 : vector<16x1xf32>
    %65 = arith.subf %63, %64 : vector<16x1xf32>
    %66 = vector.broadcast %58 : vector<16x1xf32> to vector<16x128xf32>
    %67 = arith.subf %54, %66 : vector<16x128xf32>
    %cst_35 = arith.constant 9.99999974E-6 : f32
    %68 = vector.broadcast %cst_35 : f32 to vector<16x1xf32>
    %69 = arith.addf %65, %68 : vector<16x1xf32>
    %70 = math.rsqrt %69 : vector<16x1xf32>
    %71 = vector.broadcast %70 : vector<16x1xf32> to vector<16x128xf32>
    %72 = arith.mulf %67, %71 : vector<16x128xf32>
    %c0_36 = arith.constant 0 : index
    %c4 = arith.constant 4 : index
    %c0_37 = arith.constant 0 : index
    %c0_38 = arith.constant 0 : index
    %73 = vector.load %arg9[%c0_36, %c4, %c0_37, %c0_38] : memref<1x32x1x128xf32, #tpu.memory_space<vmem>>, vector<1x1x1x128xf32>
    %74 = vector.shape_cast %73 : vector<1x1x1x128xf32> to vector<1x128xf32>
    %75 = vector.broadcast %74 : vector<1x128xf32> to vector<16x128xf32>
    %76 = arith.mulf %72, %75 : vector<16x128xf32>
    %c0_39 = arith.constant 0 : index
    %c5 = arith.constant 5 : index
    %c0_40 = arith.constant 0 : index
    %c0_41 = arith.constant 0 : index
    %77 = vector.load %arg9[%c0_39, %c5, %c0_40, %c0_41] : memref<1x32x1x128xf32, #tpu.memory_space<vmem>>, vector<1x1x1x128xf32>
    %78 = vector.shape_cast %77 : vector<1x1x1x128xf32> to vector<1x128xf32>
    %79 = vector.broadcast %78 : vector<1x128xf32> to vector<16x128xf32>
    %80 = arith.addf %76, %79 : vector<16x128xf32>
    %81 = arith.truncf %80 : vector<16x128xf32> to vector<16x128xbf16>
    %c0_42 = arith.constant 0 : index
    %c2_43 = arith.constant 2 : index
    %c0_44 = arith.constant 0 : index
    %c0_45 = arith.constant 0 : index
    %82 = vector.load %arg8[%c0_42, %c2_43, %c0_44, %c0_45] : memref<1x11x128x128xbf16, #tpu.memory_space<vmem>>, vector<1x1x128x128xbf16>
    %83 = vector.shape_cast %82 : vector<1x1x128x128xbf16> to vector<128x128xbf16>
    %cst_46 = arith.constant dense<0.000000e+00> : vector<16x128xf32>
    %84 = tpu.matmul %81, %83, %cst_46 {dimension_numbers = #tpu.dot_dimension_numbers<[1], [0], [0], [1], [0, 0, 1, 1], [], []>} : vector<16x128xbf16>, vector<128x128xbf16>, vector<16x128xf32> -> vector<16x128xf32>
    %c0_47 = arith.constant 0 : index
    %c6 = arith.constant 6 : index
    %c0_48 = arith.constant 0 : index
    %c0_49 = arith.constant 0 : index
    %85 = vector.load %arg9[%c0_47, %c6, %c0_48, %c0_49] : memref<1x32x1x128xf32, #tpu.memory_space<vmem>>, vector<1x1x1x128xf32>
    %86 = vector.shape_cast %85 : vector<1x1x1x128xf32> to vector<1x128xf32>
    %87 = vector.broadcast %86 : vector<1x128xf32> to vector<16x128xf32>
    %88 = arith.addf %84, %87 : vector<16x128xf32>
    %89 = arith.truncf %80 : vector<16x128xf32> to vector<16x128xbf16>
    %c0_50 = arith.constant 0 : index
    %c3_51 = arith.constant 3 : index
    %c0_52 = arith.constant 0 : index
    %c0_53 = arith.constant 0 : index
    %90 = vector.load %arg8[%c0_50, %c3_51, %c0_52, %c0_53] : memref<1x11x128x128xbf16, #tpu.memory_space<vmem>>, vector<1x1x128x128xbf16>
    %91 = vector.shape_cast %90 : vector<1x1x128x128xbf16> to vector<128x128xbf16>
    %cst_54 = arith.constant dense<0.000000e+00> : vector<16x128xf32>
    %92 = tpu.matmul %89, %91, %cst_54 {dimension_numbers = #tpu.dot_dimension_numbers<[1], [0], [0], [1], [0, 0, 1, 1], [], []>} : vector<16x128xbf16>, vector<128x128xbf16>, vector<16x128xf32> -> vector<16x128xf32>
    %c0_55 = arith.constant 0 : index
    %c7 = arith.constant 7 : index
    %c0_56 = arith.constant 0 : index
    %c0_57 = arith.constant 0 : index
    %93 = vector.load %arg9[%c0_55, %c7, %c0_56, %c0_57] : memref<1x32x1x128xf32, #tpu.memory_space<vmem>>, vector<1x1x1x128xf32>
    %94 = vector.shape_cast %93 : vector<1x1x1x128xf32> to vector<1x128xf32>
    %95 = vector.broadcast %94 : vector<1x128xf32> to vector<16x128xf32>
    %96 = arith.addf %92, %95 : vector<16x128xf32>
    %97 = arith.truncf %80 : vector<16x128xf32> to vector<16x128xbf16>
    %c0_58 = arith.constant 0 : index
    %c4_59 = arith.constant 4 : index
    %c0_60 = arith.constant 0 : index
    %c0_61 = arith.constant 0 : index
    %98 = vector.load %arg8[%c0_58, %c4_59, %c0_60, %c0_61] : memref<1x11x128x128xbf16, #tpu.memory_space<vmem>>, vector<1x1x128x128xbf16>
    %99 = vector.shape_cast %98 : vector<1x1x128x128xbf16> to vector<128x128xbf16>
    %cst_62 = arith.constant dense<0.000000e+00> : vector<16x128xf32>
    %100 = tpu.matmul %97, %99, %cst_62 {dimension_numbers = #tpu.dot_dimension_numbers<[1], [0], [0], [1], [0, 0, 1, 1], [], []>} : vector<16x128xbf16>, vector<128x128xbf16>, vector<16x128xf32> -> vector<16x128xf32>
    %c0_63 = arith.constant 0 : index
    %c8 = arith.constant 8 : index
    %c0_64 = arith.constant 0 : index
    %c0_65 = arith.constant 0 : index
    %101 = vector.load %arg9[%c0_63, %c8, %c0_64, %c0_65] : memref<1x32x1x128xf32, #tpu.memory_space<vmem>>, vector<1x1x1x128xf32>
    %102 = vector.shape_cast %101 : vector<1x1x1x128xf32> to vector<1x128xf32>
    %103 = vector.broadcast %102 : vector<1x128xf32> to vector<16x128xf32>
    %104 = arith.addf %100, %103 : vector<16x128xf32>
    %c0_66 = arith.constant 0 : index
    %c0_67 = arith.constant 0 : index
    %105 = vector.load %arg5[%c0_66, %c0_67] : memref<32x128xf32, #tpu.memory_space<vmem>>, vector<32x128xf32>
    %106 = arith.truncf %105 : vector<32x128xf32> to vector<32x128xbf16>
    %107 = vector.extract_strided_slice %88 {offsets = [0, 0], sizes = [8, 128], strides = [1, 1]} : vector<16x128xf32> to vector<8x128xf32>
    %108 = vector.extract_strided_slice %96 {offsets = [0, 0], sizes = [8, 128], strides = [1, 1]} : vector<16x128xf32> to vector<8x128xf32>
    %109 = vector.extract_strided_slice %104 {offsets = [0, 0], sizes = [8, 128], strides = [1, 1]} : vector<16x128xf32> to vector<8x128xf32>
    %110 = tpu.concatenate %108, %108, %108, %108 in 0 : vector<8x128xf32>, vector<8x128xf32>, vector<8x128xf32>, vector<8x128xf32> -> vector<32x128xf32>
    %111 = arith.mulf %110, %105 : vector<32x128xf32>
    %112 = tpu.concatenate %109, %109, %109, %109 in 0 : vector<8x128xf32>, vector<8x128xf32>, vector<8x128xf32>, vector<8x128xf32> -> vector<32x128xf32>
    %113 = arith.mulf %112, %105 : vector<32x128xf32>
    %114 = arith.truncf %107 : vector<8x128xf32> to vector<8x128xbf16>
    %115 = arith.truncf %111 : vector<32x128xf32> to vector<32x128xbf16>
    %cst_68 = arith.constant dense<0.000000e+00> : vector<8x32xf32>
    %116 = tpu.matmul %114, %115, %cst_68 {dimension_numbers = #tpu.dot_dimension_numbers<[1], [1], [0], [0], [0, 0, 1, 0], [], []>} : vector<8x128xbf16>, vector<32x128xbf16>, vector<8x32xf32> -> vector<8x32xf32>
    %cst_69 = arith.constant 0.353553385 : f32
    %117 = vector.broadcast %cst_69 : f32 to vector<8x32xf32>
    %118 = arith.mulf %116, %117 : vector<8x32xf32>
    %c0_70 = arith.constant 0 : index
    %c0_71 = arith.constant 0 : index
    %c0_72 = arith.constant 0 : index
    %119 = vector.load %arg4[%c0_70, %c0_71, %c0_72] : memref<2x1x32xf32, #tpu.memory_space<vmem>>, vector<1x1x32xf32>
    %120 = vector.shape_cast %119 : vector<1x1x32xf32> to vector<1x32xf32>
    %121 = vector.broadcast %120 : vector<1x32xf32> to vector<8x32xf32>
    %122 = arith.addf %118, %121 : vector<8x32xf32>
    %cst_73 = arith.constant dense<0xFF800000> : vector<8xf32>
    %123 = vector.multi_reduction <maximumf>, %122, %cst_73 [1] : vector<8x32xf32> to vector<8xf32>
    %124 = vector.shape_cast %123 : vector<8xf32> to vector<8x1xf32>
    %125 = vector.broadcast %124 : vector<8x1xf32> to vector<8x32xf32>
    %126 = arith.subf %122, %125 : vector<8x32xf32>
    %127 = math.exp %126 : vector<8x32xf32>
    %128 = arith.truncf %127 : vector<8x32xf32> to vector<8x32xbf16>
    %cst_74 = arith.constant dense<0.000000e+00> : vector<8x128xf32>
    %129 = tpu.matmul %128, %106, %cst_74 {dimension_numbers = #tpu.dot_dimension_numbers<[1], [0], [0], [1], [0, 0, 1, 1], [], []>} : vector<8x32xbf16>, vector<32x128xbf16>, vector<8x128xf32> -> vector<8x128xf32>
    %130 = arith.truncf %113 : vector<32x128xf32> to vector<32x128xbf16>
    %cst_75 = arith.constant dense<0.000000e+00> : vector<8x128xf32>
    %131 = tpu.matmul %128, %130, %cst_75 {dimension_numbers = #tpu.dot_dimension_numbers<[1], [0], [0], [1], [0, 0, 1, 1], [], []>} : vector<8x32xbf16>, vector<32x128xbf16>, vector<8x128xf32> -> vector<8x128xf32>
    %132 = arith.divf %131, %129 : vector<8x128xf32>
    %133 = vector.extract_strided_slice %88 {offsets = [8, 0], sizes = [8, 128], strides = [1, 1]} : vector<16x128xf32> to vector<8x128xf32>
    %134 = vector.extract_strided_slice %96 {offsets = [8, 0], sizes = [8, 128], strides = [1, 1]} : vector<16x128xf32> to vector<8x128xf32>
    %135 = vector.extract_strided_slice %104 {offsets = [8, 0], sizes = [8, 128], strides = [1, 1]} : vector<16x128xf32> to vector<8x128xf32>
    %136 = tpu.concatenate %134, %134, %134, %134 in 0 : vector<8x128xf32>, vector<8x128xf32>, vector<8x128xf32>, vector<8x128xf32> -> vector<32x128xf32>
    %137 = arith.mulf %136, %105 : vector<32x128xf32>
    %138 = tpu.concatenate %135, %135, %135, %135 in 0 : vector<8x128xf32>, vector<8x128xf32>, vector<8x128xf32>, vector<8x128xf32> -> vector<32x128xf32>
    %139 = arith.mulf %138, %105 : vector<32x128xf32>
    %140 = arith.truncf %133 : vector<8x128xf32> to vector<8x128xbf16>
    %141 = arith.truncf %137 : vector<32x128xf32> to vector<32x128xbf16>
    %cst_76 = arith.constant dense<0.000000e+00> : vector<8x32xf32>
    %142 = tpu.matmul %140, %141, %cst_76 {dimension_numbers = #tpu.dot_dimension_numbers<[1], [1], [0], [0], [0, 0, 1, 0], [], []>} : vector<8x128xbf16>, vector<32x128xbf16>, vector<8x32xf32> -> vector<8x32xf32>
    %cst_77 = arith.constant 0.353553385 : f32
    %143 = vector.broadcast %cst_77 : f32 to vector<8x32xf32>
    %144 = arith.mulf %142, %143 : vector<8x32xf32>
    %c1_78 = arith.constant 1 : index
    %c0_79 = arith.constant 0 : index
    %c0_80 = arith.constant 0 : index
    %145 = vector.load %arg4[%c1_78, %c0_79, %c0_80] : memref<2x1x32xf32, #tpu.memory_space<vmem>>, vector<1x1x32xf32>
    %146 = vector.shape_cast %145 : vector<1x1x32xf32> to vector<1x32xf32>
    %147 = vector.broadcast %146 : vector<1x32xf32> to vector<8x32xf32>
    %148 = arith.addf %144, %147 : vector<8x32xf32>
    %cst_81 = arith.constant dense<0xFF800000> : vector<8xf32>
    %149 = vector.multi_reduction <maximumf>, %148, %cst_81 [1] : vector<8x32xf32> to vector<8xf32>
    %150 = vector.shape_cast %149 : vector<8xf32> to vector<8x1xf32>
    %151 = vector.broadcast %150 : vector<8x1xf32> to vector<8x32xf32>
    %152 = arith.subf %148, %151 : vector<8x32xf32>
    %153 = math.exp %152 : vector<8x32xf32>
    %154 = arith.truncf %153 : vector<8x32xf32> to vector<8x32xbf16>
    %cst_82 = arith.constant dense<0.000000e+00> : vector<8x128xf32>
    %155 = tpu.matmul %154, %106, %cst_82 {dimension_numbers = #tpu.dot_dimension_numbers<[1], [0], [0], [1], [0, 0, 1, 1], [], []>} : vector<8x32xbf16>, vector<32x128xbf16>, vector<8x128xf32> -> vector<8x128xf32>
    %156 = arith.truncf %139 : vector<32x128xf32> to vector<32x128xbf16>
    %cst_83 = arith.constant dense<0.000000e+00> : vector<8x128xf32>
    %157 = tpu.matmul %154, %156, %cst_83 {dimension_numbers = #tpu.dot_dimension_numbers<[1], [0], [0], [1], [0, 0, 1, 1], [], []>} : vector<8x32xbf16>, vector<32x128xbf16>, vector<8x128xf32> -> vector<8x128xf32>
    %158 = arith.divf %157, %155 : vector<8x128xf32>
    %159 = tpu.concatenate %132, %158 in 0 : vector<8x128xf32>, vector<8x128xf32> -> vector<16x128xf32>
    %160 = arith.truncf %159 : vector<16x128xf32> to vector<16x128xbf16>
    %c0_84 = arith.constant 0 : index
    %c5_85 = arith.constant 5 : index
    %c0_86 = arith.constant 0 : index
    %c0_87 = arith.constant 0 : index
    %161 = vector.load %arg8[%c0_84, %c5_85, %c0_86, %c0_87] : memref<1x11x128x128xbf16, #tpu.memory_space<vmem>>, vector<1x1x128x128xbf16>
    %162 = vector.shape_cast %161 : vector<1x1x128x128xbf16> to vector<128x128xbf16>
    %cst_88 = arith.constant dense<0.000000e+00> : vector<16x128xf32>
    %163 = tpu.matmul %160, %162, %cst_88 {dimension_numbers = #tpu.dot_dimension_numbers<[1], [0], [0], [1], [0, 0, 1, 1], [], []>} : vector<16x128xbf16>, vector<128x128xbf16>, vector<16x128xf32> -> vector<16x128xf32>
    %164 = arith.addf %54, %163 : vector<16x128xf32>
    %c0_89 = arith.constant 0 : index
    %c9 = arith.constant 9 : index
    %c0_90 = arith.constant 0 : index
    %c0_91 = arith.constant 0 : index
    %165 = vector.load %arg9[%c0_89, %c9, %c0_90, %c0_91] : memref<1x32x1x128xf32, #tpu.memory_space<vmem>>, vector<1x1x1x128xf32>
    %166 = vector.shape_cast %165 : vector<1x1x1x128xf32> to vector<1x128xf32>
    %167 = vector.broadcast %166 : vector<1x128xf32> to vector<16x128xf32>
    %168 = arith.addf %164, %167 : vector<16x128xf32>
    %cst_92 = arith.constant dense<0.000000e+00> : vector<16xf32>
    %169 = vector.multi_reduction <add>, %168, %cst_92 [1] : vector<16x128xf32> to vector<16xf32>
    %170 = vector.shape_cast %169 : vector<16xf32> to vector<16x1xf32>
    %cst_93 = arith.constant 3.125000e-02 : f32
    %171 = vector.broadcast %cst_93 : f32 to vector<16x1xf32>
    %172 = arith.mulf %170, %171 : vector<16x1xf32>
    %173 = arith.mulf %168, %168 : vector<16x128xf32>
    %cst_94 = arith.constant dense<0.000000e+00> : vector<16xf32>
    %174 = vector.multi_reduction <add>, %173, %cst_94 [1] : vector<16x128xf32> to vector<16xf32>
    %175 = vector.shape_cast %174 : vector<16xf32> to vector<16x1xf32>
    %cst_95 = arith.constant 3.125000e-02 : f32
    %176 = vector.broadcast %cst_95 : f32 to vector<16x1xf32>
    %177 = arith.mulf %175, %176 : vector<16x1xf32>
    %178 = arith.mulf %172, %172 : vector<16x1xf32>
    %179 = arith.subf %177, %178 : vector<16x1xf32>
    %180 = vector.broadcast %172 : vector<16x1xf32> to vector<16x128xf32>
    %181 = arith.subf %168, %180 : vector<16x128xf32>
    %cst_96 = arith.constant 9.99999974E-6 : f32
    %182 = vector.broadcast %cst_96 : f32 to vector<16x1xf32>
    %183 = arith.addf %179, %182 : vector<16x1xf32>
    %184 = math.rsqrt %183 : vector<16x1xf32>
    %185 = vector.broadcast %184 : vector<16x1xf32> to vector<16x128xf32>
    %186 = arith.mulf %181, %185 : vector<16x128xf32>
    %c0_97 = arith.constant 0 : index
    %c10 = arith.constant 10 : index
    %c0_98 = arith.constant 0 : index
    %c0_99 = arith.constant 0 : index
    %187 = vector.load %arg9[%c0_97, %c10, %c0_98, %c0_99] : memref<1x32x1x128xf32, #tpu.memory_space<vmem>>, vector<1x1x1x128xf32>
    %188 = vector.shape_cast %187 : vector<1x1x1x128xf32> to vector<1x128xf32>
    %189 = vector.broadcast %188 : vector<1x128xf32> to vector<16x128xf32>
    %190 = arith.mulf %186, %189 : vector<16x128xf32>
    %c0_100 = arith.constant 0 : index
    %c11 = arith.constant 11 : index
    %c0_101 = arith.constant 0 : index
    %c0_102 = arith.constant 0 : index
    %191 = vector.load %arg9[%c0_100, %c11, %c0_101, %c0_102] : memref<1x32x1x128xf32, #tpu.memory_space<vmem>>, vector<1x1x1x128xf32>
    %192 = vector.shape_cast %191 : vector<1x1x1x128xf32> to vector<1x128xf32>
    %193 = vector.broadcast %192 : vector<1x128xf32> to vector<16x128xf32>
    %194 = arith.addf %190, %193 : vector<16x128xf32>
    %195 = arith.truncf %194 : vector<16x128xf32> to vector<16x128xbf16>
    %c0_103 = arith.constant 0 : index
    %c6_104 = arith.constant 6 : index
    %c0_105 = arith.constant 0 : index
    %c0_106 = arith.constant 0 : index
    %196 = vector.load %arg8[%c0_103, %c6_104, %c0_105, %c0_106] : memref<1x11x128x128xbf16, #tpu.memory_space<vmem>>, vector<1x1x128x128xbf16>
    %197 = vector.shape_cast %196 : vector<1x1x128x128xbf16> to vector<128x128xbf16>
    %cst_107 = arith.constant dense<0.000000e+00> : vector<16x128xf32>
    %198 = tpu.matmul %195, %197, %cst_107 {dimension_numbers = #tpu.dot_dimension_numbers<[1], [0], [0], [1], [0, 0, 1, 1], [], []>} : vector<16x128xbf16>, vector<128x128xbf16>, vector<16x128xf32> -> vector<16x128xf32>
    %c0_108 = arith.constant 0 : index
    %c12 = arith.constant 12 : index
    %c0_109 = arith.constant 0 : index
    %c0_110 = arith.constant 0 : index
    %199 = vector.load %arg9[%c0_108, %c12, %c0_109, %c0_110] : memref<1x32x1x128xf32, #tpu.memory_space<vmem>>, vector<1x1x1x128xf32>
    %200 = vector.shape_cast %199 : vector<1x1x1x128xf32> to vector<1x128xf32>
    %201 = vector.broadcast %200 : vector<1x128xf32> to vector<16x128xf32>
    %202 = arith.addf %198, %201 : vector<16x128xf32>
    %203 = arith.truncf %194 : vector<16x128xf32> to vector<16x128xbf16>
    %c0_111 = arith.constant 0 : index
    %c7_112 = arith.constant 7 : index
    %c0_113 = arith.constant 0 : index
    %c0_114 = arith.constant 0 : index
    %204 = vector.load %arg8[%c0_111, %c7_112, %c0_113, %c0_114] : memref<1x11x128x128xbf16, #tpu.memory_space<vmem>>, vector<1x1x128x128xbf16>
    %205 = vector.shape_cast %204 : vector<1x1x128x128xbf16> to vector<128x128xbf16>
    %cst_115 = arith.constant dense<0.000000e+00> : vector<16x128xf32>
    %206 = tpu.matmul %203, %205, %cst_115 {dimension_numbers = #tpu.dot_dimension_numbers<[1], [0], [0], [1], [0, 0, 1, 1], [], []>} : vector<16x128xbf16>, vector<128x128xbf16>, vector<16x128xf32> -> vector<16x128xf32>
    %c0_116 = arith.constant 0 : index
    %c13 = arith.constant 13 : index
    %c0_117 = arith.constant 0 : index
    %c0_118 = arith.constant 0 : index
    %207 = vector.load %arg9[%c0_116, %c13, %c0_117, %c0_118] : memref<1x32x1x128xf32, #tpu.memory_space<vmem>>, vector<1x1x1x128xf32>
    %208 = vector.shape_cast %207 : vector<1x1x1x128xf32> to vector<1x128xf32>
    %209 = vector.broadcast %208 : vector<1x128xf32> to vector<16x128xf32>
    %210 = arith.addf %206, %209 : vector<16x128xf32>
    %211 = arith.negf %210 : vector<16x128xf32>
    %212 = math.exp %211 : vector<16x128xf32>
    %cst_119 = arith.constant 1.000000e+00 : f32
    %213 = vector.broadcast %cst_119 : f32 to vector<16x128xf32>
    %214 = arith.addf %213, %212 : vector<16x128xf32>
    %215 = arith.divf %213, %214 : vector<16x128xf32>
    %216 = arith.mulf %202, %215 : vector<16x128xf32>
    %217 = tpu.iota {dimensions = array<i32: 0>} : vector<8x128xi32>
    %c8_i32 = arith.constant 8 : i32
    %218 = vector.broadcast %c8_i32 : i32 to vector<8x128xi32>
    %219 = arith.cmpi slt, %217, %218 : vector<8x128xi32>
    %220 = arith.extui %219 : vector<8x128xi1> to vector<8x128xi32>
    %221 = arith.sitofp %220 : vector<8x128xi32> to vector<8x128xf32>
    %c1_i32 = arith.constant 1 : i32
    %222 = vector.broadcast %c1_i32 : i32 to vector<8x128xi32>
    %223 = arith.cmpi sge, %217, %222 : vector<8x128xi32>
    %224 = arith.extui %223 : vector<8x128xi1> to vector<8x128xi32>
    %225 = arith.sitofp %224 : vector<8x128xi32> to vector<8x128xf32>
    %c7_i32 = arith.constant 7 : i32
    %226 = vector.broadcast %c7_i32 : i32 to vector<8x128xi32>
    %227 = arith.cmpi slt, %217, %226 : vector<8x128xi32>
    %228 = arith.extui %227 : vector<8x128xi1> to vector<8x128xi32>
    %229 = arith.sitofp %228 : vector<8x128xi32> to vector<8x128xf32>
    %c0_120 = arith.constant 0 : index
    %c24 = arith.constant 24 : index
    %c0_121 = arith.constant 0 : index
    %c0_122 = arith.constant 0 : index
    %230 = vector.load %arg9[%c0_120, %c24, %c0_121, %c0_122] : memref<1x32x1x128xf32, #tpu.memory_space<vmem>>, vector<1x1x1x128xf32>
    %231 = vector.shape_cast %230 : vector<1x1x1x128xf32> to vector<1x128xf32>
    %c0_123 = arith.constant 0 : index
    %c25 = arith.constant 25 : index
    %c0_124 = arith.constant 0 : index
    %c0_125 = arith.constant 0 : index
    %232 = vector.load %arg9[%c0_123, %c25, %c0_124, %c0_125] : memref<1x32x1x128xf32, #tpu.memory_space<vmem>>, vector<1x1x1x128xf32>
    %233 = vector.shape_cast %232 : vector<1x1x1x128xf32> to vector<1x128xf32>
    %c0_126 = arith.constant 0 : index
    %c26 = arith.constant 26 : index
    %c0_127 = arith.constant 0 : index
    %c0_128 = arith.constant 0 : index
    %234 = vector.load %arg9[%c0_126, %c26, %c0_127, %c0_128] : memref<1x32x1x128xf32, #tpu.memory_space<vmem>>, vector<1x1x1x128xf32>
    %235 = vector.shape_cast %234 : vector<1x1x1x128xf32> to vector<1x128xf32>
    %236 = vector.extract_strided_slice %216 {offsets = [0, 0], sizes = [8, 128], strides = [1, 1]} : vector<16x128xf32> to vector<8x128xf32>
    %237 = arith.mulf %236, %221 : vector<8x128xf32>
    %c1_i32_129 = arith.constant 1 : i32
    %238 = tpu.dynamic_rotate %237 by %c1_i32_129 dim 0 : vector<8x128xf32>, i32 -> vector<8x128xf32>
    %239 = arith.mulf %238, %225 : vector<8x128xf32>
    %c7_i32_130 = arith.constant 7 : i32
    %240 = tpu.dynamic_rotate %237 by %c7_i32_130 dim 0 : vector<8x128xf32>, i32 -> vector<8x128xf32>
    %241 = arith.mulf %240, %229 : vector<8x128xf32>
    %242 = vector.broadcast %231 : vector<1x128xf32> to vector<8x128xf32>
    %243 = arith.mulf %239, %242 : vector<8x128xf32>
    %244 = vector.broadcast %233 : vector<1x128xf32> to vector<8x128xf32>
    %245 = arith.mulf %237, %244 : vector<8x128xf32>
    %246 = arith.addf %243, %245 : vector<8x128xf32>
    %247 = vector.broadcast %235 : vector<1x128xf32> to vector<8x128xf32>
    %248 = arith.mulf %241, %247 : vector<8x128xf32>
    %249 = arith.addf %246, %248 : vector<8x128xf32>
    %250 = vector.extract_strided_slice %216 {offsets = [8, 0], sizes = [8, 128], strides = [1, 1]} : vector<16x128xf32> to vector<8x128xf32>
    %251 = arith.mulf %250, %221 : vector<8x128xf32>
    %c1_i32_131 = arith.constant 1 : i32
    %252 = tpu.dynamic_rotate %251 by %c1_i32_131 dim 0 : vector<8x128xf32>, i32 -> vector<8x128xf32>
    %253 = arith.mulf %252, %225 : vector<8x128xf32>
    %c7_i32_132 = arith.constant 7 : i32
    %254 = tpu.dynamic_rotate %251 by %c7_i32_132 dim 0 : vector<8x128xf32>, i32 -> vector<8x128xf32>
    %255 = arith.mulf %254, %229 : vector<8x128xf32>
    %256 = vector.broadcast %231 : vector<1x128xf32> to vector<8x128xf32>
    %257 = arith.mulf %253, %256 : vector<8x128xf32>
    %258 = vector.broadcast %233 : vector<1x128xf32> to vector<8x128xf32>
    %259 = arith.mulf %251, %258 : vector<8x128xf32>
    %260 = arith.addf %257, %259 : vector<8x128xf32>
    %261 = vector.broadcast %235 : vector<1x128xf32> to vector<8x128xf32>
    %262 = arith.mulf %255, %261 : vector<8x128xf32>
    %263 = arith.addf %260, %262 : vector<8x128xf32>
    %264 = tpu.concatenate %249, %263 in 0 : vector<8x128xf32>, vector<8x128xf32> -> vector<16x128xf32>
    %c0_133 = arith.constant 0 : index
    %c14 = arith.constant 14 : index
    %c0_134 = arith.constant 0 : index
    %c0_135 = arith.constant 0 : index
    %265 = vector.load %arg9[%c0_133, %c14, %c0_134, %c0_135] : memref<1x32x1x128xf32, #tpu.memory_space<vmem>>, vector<1x1x1x128xf32>
    %266 = vector.shape_cast %265 : vector<1x1x1x128xf32> to vector<1x128xf32>
    %267 = vector.broadcast %266 : vector<1x128xf32> to vector<16x128xf32>
    %268 = arith.addf %264, %267 : vector<16x128xf32>
    %c0_136 = arith.constant 0 : index
    %c15 = arith.constant 15 : index
    %c0_137 = arith.constant 0 : index
    %c0_138 = arith.constant 0 : index
    %269 = vector.load %arg9[%c0_136, %c15, %c0_137, %c0_138] : memref<1x32x1x128xf32, #tpu.memory_space<vmem>>, vector<1x1x1x128xf32>
    %270 = vector.shape_cast %269 : vector<1x1x1x128xf32> to vector<1x128xf32>
    %271 = vector.broadcast %270 : vector<1x128xf32> to vector<16x128xf32>
    %272 = arith.mulf %268, %271 : vector<16x128xf32>
    %c0_139 = arith.constant 0 : index
    %c16 = arith.constant 16 : index
    %c0_140 = arith.constant 0 : index
    %c0_141 = arith.constant 0 : index
    %273 = vector.load %arg9[%c0_139, %c16, %c0_140, %c0_141] : memref<1x32x1x128xf32, #tpu.memory_space<vmem>>, vector<1x1x1x128xf32>
    %274 = vector.shape_cast %273 : vector<1x1x1x128xf32> to vector<1x128xf32>
    %275 = vector.broadcast %274 : vector<1x128xf32> to vector<16x128xf32>
    %276 = arith.addf %272, %275 : vector<16x128xf32>
    %277 = arith.negf %276 : vector<16x128xf32>
    %278 = math.exp %277 : vector<16x128xf32>
    %cst_142 = arith.constant 1.000000e+00 : f32
    %279 = vector.broadcast %cst_142 : f32 to vector<16x128xf32>
    %280 = arith.addf %279, %278 : vector<16x128xf32>
    %281 = arith.divf %279, %280 : vector<16x128xf32>
    %282 = arith.mulf %276, %281 : vector<16x128xf32>
    %283 = arith.truncf %282 : vector<16x128xf32> to vector<16x128xbf16>
    %c0_143 = arith.constant 0 : index
    %c8_144 = arith.constant 8 : index
    %c0_145 = arith.constant 0 : index
    %c0_146 = arith.constant 0 : index
    %284 = vector.load %arg8[%c0_143, %c8_144, %c0_145, %c0_146] : memref<1x11x128x128xbf16, #tpu.memory_space<vmem>>, vector<1x1x128x128xbf16>
    %285 = vector.shape_cast %284 : vector<1x1x128x128xbf16> to vector<128x128xbf16>
    %cst_147 = arith.constant dense<0.000000e+00> : vector<16x128xf32>
    %286 = tpu.matmul %283, %285, %cst_147 {dimension_numbers = #tpu.dot_dimension_numbers<[1], [0], [0], [1], [0, 0, 1, 1], [], []>} : vector<16x128xbf16>, vector<128x128xbf16>, vector<16x128xf32> -> vector<16x128xf32>
    %287 = arith.addf %168, %286 : vector<16x128xf32>
    %c0_148 = arith.constant 0 : index
    %c17 = arith.constant 17 : index
    %c0_149 = arith.constant 0 : index
    %c0_150 = arith.constant 0 : index
    %288 = vector.load %arg9[%c0_148, %c17, %c0_149, %c0_150] : memref<1x32x1x128xf32, #tpu.memory_space<vmem>>, vector<1x1x1x128xf32>
    %289 = vector.shape_cast %288 : vector<1x1x1x128xf32> to vector<1x128xf32>
    %290 = vector.broadcast %289 : vector<1x128xf32> to vector<16x128xf32>
    %291 = arith.addf %287, %290 : vector<16x128xf32>
    %cst_151 = arith.constant dense<0.000000e+00> : vector<16xf32>
    %292 = vector.multi_reduction <add>, %291, %cst_151 [1] : vector<16x128xf32> to vector<16xf32>
    %293 = vector.shape_cast %292 : vector<16xf32> to vector<16x1xf32>
    %cst_152 = arith.constant 3.125000e-02 : f32
    %294 = vector.broadcast %cst_152 : f32 to vector<16x1xf32>
    %295 = arith.mulf %293, %294 : vector<16x1xf32>
    %296 = arith.mulf %291, %291 : vector<16x128xf32>
    %cst_153 = arith.constant dense<0.000000e+00> : vector<16xf32>
    %297 = vector.multi_reduction <add>, %296, %cst_153 [1] : vector<16x128xf32> to vector<16xf32>
    %298 = vector.shape_cast %297 : vector<16xf32> to vector<16x1xf32>
    %cst_154 = arith.constant 3.125000e-02 : f32
    %299 = vector.broadcast %cst_154 : f32 to vector<16x1xf32>
    %300 = arith.mulf %298, %299 : vector<16x1xf32>
    %301 = arith.mulf %295, %295 : vector<16x1xf32>
    %302 = arith.subf %300, %301 : vector<16x1xf32>
    %303 = vector.broadcast %295 : vector<16x1xf32> to vector<16x128xf32>
    %304 = arith.subf %291, %303 : vector<16x128xf32>
    %cst_155 = arith.constant 9.99999974E-6 : f32
    %305 = vector.broadcast %cst_155 : f32 to vector<16x1xf32>
    %306 = arith.addf %302, %305 : vector<16x1xf32>
    %307 = math.rsqrt %306 : vector<16x1xf32>
    %308 = vector.broadcast %307 : vector<16x1xf32> to vector<16x128xf32>
    %309 = arith.mulf %304, %308 : vector<16x128xf32>
    %c0_156 = arith.constant 0 : index
    %c18 = arith.constant 18 : index
    %c0_157 = arith.constant 0 : index
    %c0_158 = arith.constant 0 : index
    %310 = vector.load %arg9[%c0_156, %c18, %c0_157, %c0_158] : memref<1x32x1x128xf32, #tpu.memory_space<vmem>>, vector<1x1x1x128xf32>
    %311 = vector.shape_cast %310 : vector<1x1x1x128xf32> to vector<1x128xf32>
    %312 = vector.broadcast %311 : vector<1x128xf32> to vector<16x128xf32>
    %313 = arith.mulf %309, %312 : vector<16x128xf32>
    %c0_159 = arith.constant 0 : index
    %c19 = arith.constant 19 : index
    %c0_160 = arith.constant 0 : index
    %c0_161 = arith.constant 0 : index
    %314 = vector.load %arg9[%c0_159, %c19, %c0_160, %c0_161] : memref<1x32x1x128xf32, #tpu.memory_space<vmem>>, vector<1x1x1x128xf32>
    %315 = vector.shape_cast %314 : vector<1x1x1x128xf32> to vector<1x128xf32>
    %316 = vector.broadcast %315 : vector<1x128xf32> to vector<16x128xf32>
    %317 = arith.addf %313, %316 : vector<16x128xf32>
    %318 = arith.truncf %317 : vector<16x128xf32> to vector<16x128xbf16>
    %c0_162 = arith.constant 0 : index
    %c9_163 = arith.constant 9 : index
    %c0_164 = arith.constant 0 : index
    %c0_165 = arith.constant 0 : index
    %319 = vector.load %arg8[%c0_162, %c9_163, %c0_164, %c0_165] : memref<1x11x128x128xbf16, #tpu.memory_space<vmem>>, vector<1x1x128x128xbf16>
    %320 = vector.shape_cast %319 : vector<1x1x128x128xbf16> to vector<128x128xbf16>
    %cst_166 = arith.constant dense<0.000000e+00> : vector<16x128xf32>
    %321 = tpu.matmul %318, %320, %cst_166 {dimension_numbers = #tpu.dot_dimension_numbers<[1], [0], [0], [1], [0, 0, 1, 1], [], []>} : vector<16x128xbf16>, vector<128x128xbf16>, vector<16x128xf32> -> vector<16x128xf32>
    %c0_167 = arith.constant 0 : index
    %c20 = arith.constant 20 : index
    %c0_168 = arith.constant 0 : index
    %c0_169 = arith.constant 0 : index
    %322 = vector.load %arg9[%c0_167, %c20, %c0_168, %c0_169] : memref<1x32x1x128xf32, #tpu.memory_space<vmem>>, vector<1x1x1x128xf32>
    %323 = vector.shape_cast %322 : vector<1x1x1x128xf32> to vector<1x128xf32>
    %324 = vector.broadcast %323 : vector<1x128xf32> to vector<16x128xf32>
    %325 = arith.addf %321, %324 : vector<16x128xf32>
    %326 = arith.negf %325 : vector<16x128xf32>
    %327 = math.exp %326 : vector<16x128xf32>
    %cst_170 = arith.constant 1.000000e+00 : f32
    %328 = vector.broadcast %cst_170 : f32 to vector<16x128xf32>
    %329 = arith.addf %328, %327 : vector<16x128xf32>
    %330 = arith.divf %328, %329 : vector<16x128xf32>
    %331 = arith.mulf %325, %330 : vector<16x128xf32>
    %332 = arith.truncf %331 : vector<16x128xf32> to vector<16x128xbf16>
    %c0_171 = arith.constant 0 : index
    %c10_172 = arith.constant 10 : index
    %c0_173 = arith.constant 0 : index
    %c0_174 = arith.constant 0 : index
    %333 = vector.load %arg8[%c0_171, %c10_172, %c0_173, %c0_174] : memref<1x11x128x128xbf16, #tpu.memory_space<vmem>>, vector<1x1x128x128xbf16>
    %334 = vector.shape_cast %333 : vector<1x1x128x128xbf16> to vector<128x128xbf16>
    %cst_175 = arith.constant dense<0.000000e+00> : vector<16x128xf32>
    %335 = tpu.matmul %332, %334, %cst_175 {dimension_numbers = #tpu.dot_dimension_numbers<[1], [0], [0], [1], [0, 0, 1, 1], [], []>} : vector<16x128xbf16>, vector<128x128xbf16>, vector<16x128xf32> -> vector<16x128xf32>
    %c0_176 = arith.constant 0 : index
    %c21 = arith.constant 21 : index
    %c0_177 = arith.constant 0 : index
    %c0_178 = arith.constant 0 : index
    %336 = vector.load %arg9[%c0_176, %c21, %c0_177, %c0_178] : memref<1x32x1x128xf32, #tpu.memory_space<vmem>>, vector<1x1x1x128xf32>
    %337 = vector.shape_cast %336 : vector<1x1x1x128xf32> to vector<1x128xf32>
    %338 = vector.broadcast %337 : vector<1x128xf32> to vector<16x128xf32>
    %339 = arith.addf %335, %338 : vector<16x128xf32>
    %cst_179 = arith.constant 5.000000e-01 : f32
    %340 = vector.broadcast %cst_179 : f32 to vector<16x128xf32>
    %341 = arith.mulf %340, %339 : vector<16x128xf32>
    %342 = arith.addf %291, %341 : vector<16x128xf32>
    %cst_180 = arith.constant dense<0.000000e+00> : vector<16xf32>
    %343 = vector.multi_reduction <add>, %342, %cst_180 [1] : vector<16x128xf32> to vector<16xf32>
    %344 = vector.shape_cast %343 : vector<16xf32> to vector<16x1xf32>
    %cst_181 = arith.constant 3.125000e-02 : f32
    %345 = vector.broadcast %cst_181 : f32 to vector<16x1xf32>
    %346 = arith.mulf %344, %345 : vector<16x1xf32>
    %347 = arith.mulf %342, %342 : vector<16x128xf32>
    %cst_182 = arith.constant dense<0.000000e+00> : vector<16xf32>
    %348 = vector.multi_reduction <add>, %347, %cst_182 [1] : vector<16x128xf32> to vector<16xf32>
    %349 = vector.shape_cast %348 : vector<16xf32> to vector<16x1xf32>
    %cst_183 = arith.constant 3.125000e-02 : f32
    %350 = vector.broadcast %cst_183 : f32 to vector<16x1xf32>
    %351 = arith.mulf %349, %350 : vector<16x1xf32>
    %352 = arith.mulf %346, %346 : vector<16x1xf32>
    %353 = arith.subf %351, %352 : vector<16x1xf32>
    %354 = vector.broadcast %346 : vector<16x1xf32> to vector<16x128xf32>
    %355 = arith.subf %342, %354 : vector<16x128xf32>
    %cst_184 = arith.constant 9.99999974E-6 : f32
    %356 = vector.broadcast %cst_184 : f32 to vector<16x1xf32>
    %357 = arith.addf %353, %356 : vector<16x1xf32>
    %358 = math.rsqrt %357 : vector<16x1xf32>
    %359 = vector.broadcast %358 : vector<16x1xf32> to vector<16x128xf32>
    %360 = arith.mulf %355, %359 : vector<16x128xf32>
    %c0_185 = arith.constant 0 : index
    %c22 = arith.constant 22 : index
    %c0_186 = arith.constant 0 : index
    %c0_187 = arith.constant 0 : index
    %361 = vector.load %arg9[%c0_185, %c22, %c0_186, %c0_187] : memref<1x32x1x128xf32, #tpu.memory_space<vmem>>, vector<1x1x1x128xf32>
    %362 = vector.shape_cast %361 : vector<1x1x1x128xf32> to vector<1x128xf32>
    %363 = vector.broadcast %362 : vector<1x128xf32> to vector<16x128xf32>
    %364 = arith.mulf %360, %363 : vector<16x128xf32>
    %c0_188 = arith.constant 0 : index
    %c23 = arith.constant 23 : index
    %c0_189 = arith.constant 0 : index
    %c0_190 = arith.constant 0 : index
    %365 = vector.load %arg9[%c0_188, %c23, %c0_189, %c0_190] : memref<1x32x1x128xf32, #tpu.memory_space<vmem>>, vector<1x1x1x128xf32>
    %366 = vector.shape_cast %365 : vector<1x1x1x128xf32> to vector<1x128xf32>
    %367 = vector.broadcast %366 : vector<1x128xf32> to vector<16x128xf32>
    %368 = arith.addf %364, %367 : vector<16x128xf32>
    %c0_191 = arith.constant 0 : index
    %c0_192 = arith.constant 0 : index
    %369 = vector.load %arg11[%c0_191, %c0_192] : memref<16x128xf32, #tpu.memory_space<vmem>>, vector<16x128xf32>
    tpu.vector_store %arg11[%c0_191, %c0_192], %368 {strides = array<i32>} : memref<16x128xf32, #tpu.memory_space<vmem>>, vector<16x128xf32>,
    %c0_193 = arith.constant 0 : index
    %c0_194 = arith.constant 0 : index
    %370 = vector.load %arg10[%c0_193, %c0_194] : memref<16x128xf32, #tpu.memory_space<vmem>>, vector<16x128xf32>
    %c1_i32_195 = arith.constant 1 : i32
    %371 = arith.addi %arg1, %c1_i32_195 : i32
    %372 = arith.index_cast %371 : i32 to index
    %373 = memref.load %arg2[%372] : memref<3xf32, #tpu.memory_space<smem>>
    %374 = vector.broadcast %373 : f32 to vector<16x128xf32>
    %375 = arith.mulf %374, %368 : vector<16x128xf32>
    %376 = arith.addf %370, %375 : vector<16x128xf32>
    %c0_196 = arith.constant 0 : index
    %c0_197 = arith.constant 0 : index
    %377 = vector.load %arg10[%c0_196, %c0_197] : memref<16x128xf32, #tpu.memory_space<vmem>>, vector<16x128xf32>
    tpu.vector_store %arg10[%c0_196, %c0_197], %376 {strides = array<i32>} : memref<16x128xf32, #tpu.memory_space<vmem>>, vector<16x128xf32>,
    return
  }
  func.func @transform_0(%arg0: i32, %arg1: i32) -> i32 {
    %c0_i32 = arith.constant 0 : i32
    %c0_i32_0 = arith.constant 0 : i32
    return %c0_i32 : i32
  }
  func.func @transform_1(%arg0: i32, %arg1: i32) -> (i32, i32) {
    %c0_i32 = arith.constant 0 : i32
    %c0_i32_0 = arith.constant 0 : i32
    return %arg0, %c0_i32 : i32, i32
  }
  func.func @transform_2(%arg0: i32, %arg1: i32) -> (i32, i32, i32) {
    %c0_i32 = arith.constant 0 : i32
    %c0_i32_0 = arith.constant 0 : i32
    %c0_i32_1 = arith.constant 0 : i32
    return %arg0, %c0_i32, %c0_i32_0 : i32, i32, i32
  }
  func.func @transform_3(%arg0: i32, %arg1: i32) -> (i32, i32) {
    %c0_i32 = arith.constant 0 : i32
    %c0_i32_0 = arith.constant 0 : i32
    %c0_i32_1 = arith.constant 0 : i32
    return %c0_i32, %c0_i32_0 : i32, i32
  }
  func.func @transform_4(%arg0: i32, %arg1: i32) -> (i32, i32) {
    %c0_i32 = arith.constant 0 : i32
    %c0_i32_0 = arith.constant 0 : i32
    %c0_i32_1 = arith.constant 0 : i32
    return %c0_i32, %c0_i32_0 : i32, i32
  }
  func.func @transform_5(%arg0: i32, %arg1: i32) -> (i32, i32) {
    %c0_i32 = arith.constant 0 : i32
    %c0_i32_0 = arith.constant 0 : i32
    %c0_i32_1 = arith.constant 0 : i32
    return %c0_i32, %c0_i32_0 : i32, i32
  }
  func.func @transform_6(%arg0: i32, %arg1: i32) -> (i32, i32, i32, i32) {
    %c0_i32 = arith.constant 0 : i32
    %c0_i32_0 = arith.constant 0 : i32
    %c0_i32_1 = arith.constant 0 : i32
    %c0_i32_2 = arith.constant 0 : i32
    return %arg1, %c0_i32, %c0_i32_0, %c0_i32_1 : i32, i32, i32, i32
  }
  func.func @transform_7(%arg0: i32, %arg1: i32) -> (i32, i32, i32, i32) {
    %c0_i32 = arith.constant 0 : i32
    %c0_i32_0 = arith.constant 0 : i32
    %c0_i32_1 = arith.constant 0 : i32
    %c0_i32_2 = arith.constant 0 : i32
    return %arg1, %c0_i32, %c0_i32_0, %c0_i32_1 : i32, i32, i32, i32
  }
  func.func @transform_8(%arg0: i32, %arg1: i32) -> (i32, i32) {
    %c0_i32 = arith.constant 0 : i32
    %c0_i32_0 = arith.constant 0 : i32
    return %arg0, %c0_i32 : i32, i32
  }
}

</mosaic_0001>

<bundles_post_ra>
// kernel: conformer_forward.1
= control target key start
LH: loop header
LB: loop body
LE: loop exit
PB: predicated region body
PF: predicated region fallthrough
CT: control target
= control target key end

     0   :  { %s3794_s0 = inlined_call_operand.vmem [shape: f32[3], index: 0, kind: input, shape index: {}]   ;;  %s3795_s1 = inlined_call_operand.vmem [shape: f32[16,128], index: 1, kind: input, shape index: {}]   ;;  %s3796_s2 = inlined_call_operand.vmem [shape: f32[2,1,32], index: 2, kind: input, shape index: {}]   ;;  %s3797_s3 = inlined_call_operand.vmem [shape: f32[32,128], index: 3, kind: input, shape index: {}]   ;;  %s3798_s4 = inlined_call_operand.vmem [shape: bf16[128,128], index: 4, kind: input, shape index: {}]   ;;  %s3799_s5 = inlined_call_operand.vmem [shape: f32[1,128], index: 5, kind: input, shape index: {}]   ;;  %s3800_s6 = inlined_call_operand.hbm [shape: bf16[2,11,128,128], index: 6, kind: input, shape index: {}]   ;;  %s3801_s7 = inlined_call_operand.hbm [shape: f32[2,32,1,128], index: 7, kind: input, shape index: {}]   ;;  %s3802_s8 = inlined_call_operand.hbm [shape: f32[16,128], index: 8, kind: output, shape index: {}]  }
   0x1   :  { %3806 = sst [smem:[#allocation18_spill]] %s3794_s0 }
   0x2   :  { %3807 = sst [smem:[#allocation19_spill]] %s3800_s6 }
   0x3   :  { %3808 = sst [smem:[#allocation20_spill]] %s3802_s8 }
   0x4   :  { %13 = vsyncpa [#allocation6], 0 }
   0x5   :  { %14 = vsyncpa [#allocation4], 0 }
   0x6   :  { %16 = vsyncpa [#allocation4 + $0x1], 0 }
   0x7   :  { %17 = vsyncpa [#allocation9], 0 }
   0x8   :  { %19 = vsyncpa [#allocation9 + $0x1], 0 }
   0x9   :  { %20 = vsyncpa [#allocation5], 0  ;;  %s3412_s27 = smov 0   ;;  %s3414_s28 = smov 0  }
   0xa   :  { %s3416_s29 = smov 0   ;;  %s3418_s30 = smov 0  }
   0xb   :  { %s3420_s9 = smov 0   ;;  %s3422_s10 = smov 0  }
   0xc LB: > { %3809 = sst [smem:[#allocation15_spill]] %s3356_s10  ;;  %s3803_s11 = sadd.s32 4294967295, %s3356_s10   ;;  %s3356_s10 = sphi %s3422_s10, %s26_s10   ;;  %s3352_s9 = sphi %s3420_s9, %s3829_s9   ;;  %s3348_s30 = sphi %s3418_s30, %s3828_s30   ;;  %s3344_s29 = sphi %s3416_s29, %s3827_s29   ;;  %s3340_s28 = sphi %s3414_s28, %s3826_s28   ;;  %s3336_s27 = sphi %s3412_s27, %s3825_s27  }
   0xd   : > { %p188_p0 = scmp.ne.s32.totalorder %s3344_s29, %s3340_s28  ;;  %p189_p1 = scmp.eq.s32.totalorder %s3356_s10, 0 }
   0xe   : > { %p194_p2 = scmp.ne.s32.totalorder %s3340_s28, %s3336_s27  ;;  %p3448_p3 = scmp.eq.s32.totalorder %s3803_s11, 0 }
   0xf   : > { %p190_p4 = por %p189_p1, %p188_p0  ;;  %p2316_p5 = scmp.ge.s32.totalorder %s3356_s10, 1 }
  0x10   : > { %p3455_p6 = por %p3448_p3, %p194_p2  ;;  %p257_p7 = scmp.lt.s32.totalorder %s3356_s10, 3 }
  0x11   : > { %s3812_s0 = sld [smem:[#allocation18_spill]]  ;;  %p3040_p10 = scmp.lt.s32.totalorder %s3356_s10, 2 }
  0x12   : > { %p3463_p8 = pnand %p2316_p5, %p257_p7  ;;  %s3471_s19 = sand.u32 1, %s3344_s29  }
  0x13   : > { %p3475_p12 = pnand %p3040_p10, %p190_p4  ;;  %s3358_s21 = smov [#allocation3]  }
  0x14   : > { %p3028_p9 = pneg %p3463_p8  ;;  %s35_s22 = sadd.s32 1, %s3352_s9 }
  0x15   : > { %s3013_s23 = smul.u32 704, %s3471_s19  ;;  %p36_p13 = scmp.ge.s32.totalorder %s35_s22, 2 }
  0x16   : > { %p3029_p11 = pnand %p3028_p9, %p3448_p3  ;;  %s3014_s24 = smul.u32 704, %s3352_s9 }
  0x17   : > { %s269_s17 = sshll.u32 %s3812_s0, 4  ;;  %s3831_s22 = smov (%p36_p13, %s35_s22), 0  ;;  %s270_s17 = int_to_ptr.vmem [resolvable:$true] %s269_s17 }
  0x18   : > { %3031 = dma.vmem_to_smem (!%p3029_p11), %s270_s17, 16, %s3358_s21, [#allocation6]  }
  0x19   : > { %3815 = sst [smem:[#allocation16_spill]] %s3831_s22  ;;  %s310_s15 = scalar_lea.vmem [#allocation7], %s3013_s23 }
  0x1a   : > { %s3816_s6 = sld [smem:[#allocation19_spill]]  ;;  %s318_s16 = sshll.u32 %s310_s15, 4  ;;  %s319_s16 = int_to_ptr.vmem [resolvable:$true] %s318_s16 }
  0x1b   : > { %s178_s11 = ssub.s32 %s3352_s9, %s3831_s22  ;;  %s3817_s17 = sadd.s32 1, %s3344_s29 }
  0x1c   : > { %p179_p0 = scmp.eq.s32.totalorder %s178_s11, 0  ;;  %s307_s0 = scalar_lea.sflag [#allocation4], %s3471_s19 }
  0x1d   : > { %s3359_s8 = smov 64   ;;  %s3360_s10 = smov 4  }
  0x1e   : > { %s3492_s21 = scalar_select %p179_p0, %s3344_s29, %s3817_s17  }
  0x1f   : > { %s2322_s25 = sshll.u32 %s3471_s19, 5  ;;  %s2323_s26 = sshll.u32 %s3352_s9, 5 }
  0x20   : > { %s315_s27 = scalar_lea.hbm %s3816_s6, %s3014_s24  ;;  %3818 = sst [smem:[#allocation17_spill]] %s3492_s21 }
  0x21   : > { %s316_s12 = sshll.u32 %s315_s27, 4  ;;  %s336_s15 = scalar_lea.hbm %s3801_s7, %s2323_s26  ;;  %s317_s12 = int_to_ptr.hbm [resolvable:$true] %s316_s12 }
  0x22   : > { %3035 = dma.hbm_to_vmem [thread:$0]  (!%p3475_p12), %s317_s12, 11264, %s319_s16, %s307_s0, %s3359_s8, %s3359_s8, %s3360_s10  }
  0x23   : > { %s332_s27 = scalar_lea.vmem [#allocation8], %s2322_s25  ;;  %s337_s6 = sshll.u32 %s336_s15, 4  ;;  %s338_s6 = int_to_ptr.hbm [resolvable:$true] %s337_s6 }
  0x24   : > { %s339_s11 = sshll.u32 %s332_s27, 4  ;;  %s329_s22 = scalar_lea.sflag [#allocation9], %s3471_s19  ;;  %s340_s11 = int_to_ptr.vmem [resolvable:$true] %s339_s11 }
  0x25   : > { %s3361_s17 = smov 16   ;;  %s3362_s21 = smov 1  }
  0x26   : > { %3038 = dma.hbm_to_vmem [thread:$0]  (!%p3475_p12), %s338_s6, 512, %s340_s11, %s329_s22, %s3361_s17, %s3361_s17, %s3362_s21  }
  0x27   : > { %351 = sbr.rel (%p3463_p8) target bundleno = 2698 (0xa8a), region = 52 }
  0x2c   : > { %3319 = dma.done.wait (%p3448_p3), [#allocation6], 16  }
  0x2d   : > { %3321 = vsyncadd (%p3448_p3), [#allocation6], 4294967280  ;;  %s358_s0 = sand.u32 1, %s3340_s28  }
  0x2e   : > { %s3015_s8 = smul.u32 704, %s358_s0  ;;  %s359_s10 = scalar_lea.sflag [#allocation4], %s358_s0 }
  0x30   : > { %s3512_s12 = scalar_lea.vmem [#allocation7], %s3015_s8 }
  0x31   : > { %3323 = dma.done.wait (%p3455_p6), %s359_s10, 11264  }
  0x32   : > { %3325 = vsyncadd (%p3455_p6), %s359_s10, 4294956032  ;;  %s2326_s6 = sshll.u32 %s358_s0, 5  ;;  %s369_s18 = scalar_lea.sflag [#allocation9], %s358_s0 }
  0x33   : > { %s3518_s19 = scalar_lea.vmem [#allocation8], %s2326_s6 }
  0x34   : > { %3327 = dma.done.wait (%p3455_p6), %s369_s18, 512  }
  0x35   : > { %3329 = vsyncadd (%p3455_p6), %s369_s18, 4294966784 }
  0x36   : > { %378 = sfence }
  0x37   : > { %p2327_p1 = scmp.ne.s32.totalorder %s3348_s30, 0 }
  0x38   : > { %s520_s20 = sld [smem:[#allocation3]] (!%p2327_p1) }
  0x39   : > { %432 = sbr.rel (%p2327_p1) target bundleno = 233 (0xe9), region = 68 }
  0x3e   : > { %v2924_v0 = vld [vmem:[%s3798_s4 + $0x38] sm:$0xff]  ;;  %v2923_v1 = vld [vmem:[%s3798_s4 + $0x30] sm:$0xff]  ;;  %v2922_v2 = vld [vmem:[%s3798_s4 + $0x28] sm:$0xff]  ;;  %v521_v13 = vstv %s520_s20 }
  0x3f   : > { %504 = vmatpush.bf16.msra.mxu0 %v2924_v0  ;;  %v2921_v3 = vld [vmem:[%s3798_s4 + $0x20] sm:$0xff]  ;;  %v2920_v4 = vld [vmem:[%s3798_s4 + $0x18] sm:$0xff]  ;;  %v2919_v5 = vld [vmem:[%s3798_s4 + $0x10] sm:$0xff] }
  0x40   : > { %v2918_v6 = vld [vmem:[%s3798_s4 + $0x8] sm:$0xff]  ;;  %v2917_v7 = vld [vmem:[%s3798_s4] sm:$0xff] }
  0x41   : > { %v433_v8 = vld [vmem:[%s3795_s1] sm:$0xff]  ;;  %v434_v9 = vld [vmem:[%s3795_s1 + $0x8] sm:$0xff] }
  0x42   : > { %v435_v10 = vpack.c.bf16 %v434_v9, %v433_v8  ;;  %v3101_v11 = vld [vmem:[%s3799_s5] ss:$0 sm:$0xff] }
  0x43   : > { %505 = vmatpush.bf16.msra.mxu0 %v2923_v1 }
  0x47   : > { %506 = vmatpush.bf16.msra.mxu0 %v2922_v2 }
  0x4b   : > { %507 = vmatpush.bf16.msra.mxu0 %v2921_v3 }
  0x4f   : > { %508 = vmatpush.bf16.msra.mxu0 %v2920_v4 }
  0x53   : > { %509 = vmatpush.bf16.msra.mxu0 %v2919_v5 }
  0x57   : > { %510 = vmatpush.bf16.msra.mxu0 %v2918_v6 }
  0x5b   : > { %511 = vmatpush.bf16.msra.mxu0 %v2917_v7 }
  0x5e   : > { %512 = vmatmul.bf16.vlgmr.msra.gmra.mxu0 %v435_v10 }
  0xdb   : > { %v513_v12 = vpop.f32.mrf.mxu0 }
  0xdc   : > { %v514_v14 = vadd.f32 %v3101_v11, %v513_v12 }
  0xde   : > { %518 = vst [vmem:[#allocation2] sm:$0xff] %v514_v14  ;;  %v522_v15 = vmul.f32 %v521_v13, %v514_v14 }
  0xe0   : > { %524 = vst [vmem:[#allocation10] sm:$0xff] %v522_v15 }
  0xe3   : > { %v515_v16 = vpop.f32.mrf.mxu0 }
  0xe4   : > { %v516_v17 = vadd.f32 %v3101_v11, %v515_v16 }
  0xe6   : > { %519 = vst [vmem:[#allocation2 + $0x8] sm:$0xff] %v516_v17  ;;  %v523_v18 = vmul.f32 %v521_v13, %v516_v17 }
  0xe8   : > { %525 = vst [vmem:[#allocation10 + $0x8] sm:$0xff] %v523_v18 }
  0xe9 PF: > { %v3558_v19 = vld [vmem:[#allocation2] sm:$0xff]  ;;  %v2932_v23 = vld [vmem:[%s3512_s12 + $0x38] sm:$0xff]  ;;  %v2930_v25 = vld [vmem:[%s3512_s12 + $0x28] sm:$0xff]  ;;  %s3820_s20 = sld [smem:[#allocation20_spill]]  ;;  %s3365_s21 = smov 128  }
  0xea   : > { %528 = vadd.xlane.f32.xlu0 %v3558_v19  ;;  %v534_v20 = vmul.f32 %v3558_v19, %v3558_v19  ;;  %655 = vmatpush.bf16.msra.mxu0 %v2932_v23  ;;  %v2931_v24 = vld [vmem:[%s3512_s12 + $0x30] sm:$0xff]  ;;  %v2929_v26 = vld [vmem:[%s3512_s12 + $0x20] sm:$0xff]  ;;  %v2928_v27 = vld [vmem:[%s3512_s12 + $0x18] sm:$0xff]  ;;  %s3366_s25 = smov 8  }
  0xeb   : > { %v2927_v28 = vld [vmem:[%s3512_s12 + $0x10] sm:$0xff]  ;;  %v2926_v30 = vld [vmem:[%s3512_s12 + $0x8] sm:$0xff]  ;;  %v2925_v35 = vld [vmem:[%s3512_s12] sm:$0xff] }
  0xec   : > { %536 = vadd.xlane.f32.xlu1 %v534_v20  ;;  %v3102_v59 = vld [vmem:[%s3518_s19] ss:$0 sm:$0xff]  ;;  %v3103_v1 = vld [vmem:[%s3518_s19 + $0x1] ss:$0 sm:$0xff]  ;;  %v2940_v6 = vld [vmem:[%s3512_s12 + $0x78] sm:$0xff] }
  0xed   : > { %v3563_v21 = vld [vmem:[#allocation2 + $0x8] sm:$0xff]  ;;  %780 = vmatpush.bf16.msra.mxu1 %v2940_v6  ;;  %v2939_v7 = vld [vmem:[%s3512_s12 + $0x70] sm:$0xff]  ;;  %v2938_v8 = vld [vmem:[%s3512_s12 + $0x68] sm:$0xff] }
  0xee   : > { %v535_v22 = vmul.f32 %v3563_v21, %v3563_v21  ;;  %656 = vmatpush.bf16.msra.mxu0 %v2931_v24  ;;  %v2937_v9 = vld [vmem:[%s3512_s12 + $0x60] sm:$0xff]  ;;  %v2936_v10 = vld [vmem:[%s3512_s12 + $0x58] sm:$0xff]  ;;  %v2935_v12 = vld [vmem:[%s3512_s12 + $0x50] sm:$0xff] }
  0xef   : > { %v3104_v11 = vld [vmem:[%s3518_s19 + $0x2] ss:$0 sm:$0xff]  ;;  %v2934_v15 = vld [vmem:[%s3512_s12 + $0x48] sm:$0xff]  ;;  %s2188_s22 = sshll.u32 %s3820_s20, 4  ;;  %s2189_s22 = int_to_ptr.hbm [resolvable:$true] %s2188_s22 }
  0xf0   : > { %v2933_v17 = vld [vmem:[%s3512_s12 + $0x40] sm:$0xff] }
  0xf1   : > { %781 = vmatpush.bf16.msra.mxu1 %v2939_v7  ;;  %v2961_v6 = vld [vmem:[%s3512_s12 + $0x120] sm:$0xff]  ;;  %v2944_v7 = vld [vmem:[%s3512_s12 + $0x98] sm:$0xff] }
  0xf2   : > { %530 = vadd.xlane.f32.xlu0 %v3563_v21  ;;  %657 = vmatpush.bf16.msra.mxu0 %v2930_v25 }
  0xf4   : > { %538 = vadd.xlane.f32.xlu1 %v535_v22 }
  0xf5   : > { %782 = vmatpush.bf16.msra.mxu1 %v2938_v8  ;;  %v2952_v8 = vld [vmem:[%s3512_s12 + $0xd8] sm:$0xff] }
  0xf6   : > { %658 = vmatpush.bf16.msra.mxu0 %v2929_v26 }
  0xf9   : > { %783 = vmatpush.bf16.msra.mxu1 %v2937_v9  ;;  %v2960_v9 = vld [vmem:[%s3512_s12 + $0x118] sm:$0xff] }
  0xfa   : > { %659 = vmatpush.bf16.msra.mxu0 %v2928_v27 }
  0xfd   : > { %784 = vmatpush.bf16.msra.mxu1 %v2936_v10  ;;  %v2943_v10 = vld [vmem:[%s3512_s12 + $0x90] sm:$0xff] }
  0xfe   : > { %660 = vmatpush.bf16.msra.mxu0 %v2927_v28 }
 0x101   : > { %785 = vmatpush.bf16.msra.mxu1 %v2935_v12  ;;  %v2959_v12 = vld [vmem:[%s3512_s12 + $0x110] sm:$0xff] }
 0x102   : > { %661 = vmatpush.bf16.msra.mxu0 %v2926_v30 }
 0x105   : > { %786 = vmatpush.bf16.msra.mxu1 %v2934_v15 }
 0x106   : > { %662 = vmatpush.bf16.msra.mxu0 %v2925_v35 }
 0x109   : > { %787 = vmatpush.bf16.msra.mxu1 %v2933_v17  ;;  %v2950_v17 = vld [vmem:[%s3512_s12 + $0xc8] sm:$0xff] }
 0x15d   : > { %v529_v29 = vpop.xlane.xlu0 %528 }
 0x15e   : > { %v532_v31 = vmul.f32 0.03125, %v529_v29 }
 0x15f   : > { %v537_v32 = vpop.xlane.xlu1 %536 }
 0x160   : > { %v542_v33 = vmul.f32 %v532_v31, %v532_v31  ;;  %v540_v34 = vmul.f32 0.03125, %v537_v32  ;;  %v546_v56 = vsub.f32 %v3558_v19, %v532_v31 }
 0x162   : > { %v544_v36 = vsub.f32 %v540_v34, %v542_v33 }
 0x164   : > { %v548_v37 = vadd.f32 1e-05, %v544_v36 }
 0x165   : > { %v531_v38 = vpop.xlane.xlu0 %530 }
 0x166   : > { %3131 = vrsqrt.f32 %v548_v37  ;;  %v533_v39 = vmul.f32 0.03125, %v531_v38  ;;  %vm556_vm1 = vweird.f32 %v548_v37 }
 0x167   : > { %v539_v40 = vpop.xlane.xlu1 %538 }
 0x168   : > { %v543_v41 = vmul.f32 %v533_v39, %v533_v39  ;;  %v541_v42 = vmul.f32 0.03125, %v539_v40  ;;  %v547_v61 = vsub.f32 %v3563_v21, %v533_v39 }
 0x16a   : > { %v545_v43 = vsub.f32 %v541_v42, %v543_v41 }
 0x16c   : > { %v3132_v44 = vpop.eup %3131  ;;  %v549_v45 = vadd.f32 1e-05, %v545_v43 }
 0x16d   : > { %v551_v46 = vmul.f32 %v3132_v44, %v548_v37  ;;  %vm557_vm0 = vweird.f32 %v3132_v44 }
 0x16e   : > { %3133 = vrsqrt.f32 %v549_v45  ;;  %vm558_vm2 = vmor %vm556_vm1, %vm557_vm0  ;;  %vm566_vm4 = vweird.f32 %v549_v45 }
 0x16f   : > { %v552_v47 = vmul.f32 %v3132_v44, %v551_v46 }
 0x171   : > { %v553_v48 = vmul.f32 0.5, %v552_v47 }
 0x173   : > { %v554_v49 = vsub.f32 1.5, %v553_v48 }
 0x174   : > { %v3134_v50 = vpop.eup %3133 }
 0x175   : > { %v555_v51 = vmul.f32 %v3132_v44, %v554_v49  ;;  %v561_v52 = vmul.f32 %v3134_v50, %v549_v45  ;;  %vm567_vm3 = vweird.f32 %v3134_v50 }
 0x176   : > { %vm568_vm5 = vmor %vm566_vm4, %vm567_vm3  ;;  %vm1145_vm4 = vcmask 261120  }
 0x177   : > { %v562_v53 = vmul.f32 %v3134_v50, %v561_v52  ;;  %v559_v55 = vsel %vm558_vm2, %v3132_v44, %v555_v51 }
 0x178   : > { %v570_v58 = vmul.f32 %v559_v55, %v546_v56 }
 0x179   : > { %v563_v54 = vmul.f32 0.5, %v562_v53 }
 0x17a   : > { %v576_v0 = vmul.f32 %v3102_v59, %v570_v58 }
 0x17b   : > { %v564_v57 = vsub.f32 1.5, %v563_v54 }
 0x17c   : > { %v583_v3 = vadd.f32 %v3103_v1, %v576_v0  ;;  %v2963_v0 = vld [vmem:[%s3512_s12 + $0x130] sm:$0xff] }
 0x17d   : > { %v565_v60 = vmul.f32 %v3134_v50, %v564_v57 }
 0x17f   : > { %v569_v62 = vsel %vm568_vm5, %v3134_v50, %v565_v60  ;;  %v3105_v50 = vld [vmem:[%s3518_s19 + $0x3] ss:$0 sm:$0xff]  ;;  %v2948_v60 = vld [vmem:[%s3512_s12 + $0xb8] sm:$0xff] }
 0x180   : > { %v571_v63 = vmul.f32 %v569_v62, %v547_v61  ;;  %v2956_v61 = vld [vmem:[%s3512_s12 + $0xf8] sm:$0xff]  ;;  %927 = vmatpush.bf16.msra.mxu2 %v2948_v60 }
 0x181   : > { %v2964_v62 = vld [vmem:[%s3512_s12 + $0x138] sm:$0xff]  ;;  %1011 = vmatpush.bf16.msra.mxu3 %v2956_v61  ;;  %v3108_v61 = vld [vmem:[%s3518_s19 + $0x8] ss:$0 sm:$0xff] }
 0x182   : > { %v577_v2 = vmul.f32 %v3102_v59, %v571_v63  ;;  %1095 = vmatpush.bf16.msrb.mxu0 %v2964_v62  ;;  %v2955_v63 = vld [vmem:[%s3512_s12 + $0xf0] sm:$0xff] }
 0x184   : > { %v584_v4 = vadd.f32 %v3103_v1, %v577_v2  ;;  %v2946_v1 = vld [vmem:[%s3512_s12 + $0xa8] sm:$0xff] }
 0x185   : > { %1012 = vmatpush.bf16.msra.mxu3 %v2955_v63  ;;  %v2954_v2 = vld [vmem:[%s3512_s12 + $0xe8] sm:$0xff] }
 0x186   : > { %v585_v5 = vpack.c.bf16 %v584_v4, %v583_v3  ;;  %1096 = vmatpush.bf16.msrb.mxu0 %v2963_v0  ;;  %v2962_v3 = vld [vmem:[%s3512_s12 + $0x128] sm:$0xff]  ;;  %v2945_v4 = vld [vmem:[%s3512_s12 + $0xa0] sm:$0xff] }
 0x187   : > { %v1112_v63 = vld [vmem:[%s3797_s3 + $0x18] sm:$0xff] }
 0x188   : > { %663 = vmatmul.bf16.vlgmr.msra.gmra.mxu0 %v585_v5  ;;  %v2953_v5 = vld [vmem:[%s3512_s12 + $0xe0] sm:$0xff] }
 0x189   : > { %1013 = vmatpush.bf16.msra.mxu3 %v2954_v2  ;;  %v3641_v2 = vld [vmem:[%s3797_s3] sm:$0xff] }
 0x18a   : > { %1097 = vmatpush.bf16.msrb.mxu0 %v2962_v3  ;;  %v3646_v3 = vld [vmem:[%s3797_s3 + $0x8] sm:$0xff] }
 0x18d   : > { %1014 = vmatpush.bf16.msra.mxu3 %v2953_v5 }
 0x18e   : > { %1098 = vmatpush.bf16.msrb.mxu0 %v2961_v6 }
 0x191   : > { %1015 = vmatpush.bf16.msra.mxu3 %v2952_v8 }
 0x192   : > { %1099 = vmatpush.bf16.msrb.mxu0 %v2960_v9 }
 0x196   : > { %1100 = vmatpush.bf16.msrb.mxu0 %v2959_v12 }
 0x205   : > { %v664_v13 = vpop.f32.mrf.mxu0 }
 0x206   : > { %v665_v14 = vadd.f32 %v3104_v11, %v664_v13 }
 0x208   : > { %v2394_v16 = vmul.f32 -1.442695, %v665_v14 }
 0x20a   : > { %3135 = vpow2.f32 %v2394_v16  ;;  %v2942_v16 = vld [vmem:[%s3512_s12 + $0x88] sm:$0xff] }
 0x20d   : > { %v666_v18 = vpop.f32.mrf.mxu0 }
 0x20e   : > { %v667_v20 = vadd.f32 %v3104_v11, %v666_v18  ;;  %v2951_v11 = vld [vmem:[%s3512_s12 + $0xd0] sm:$0xff]  ;;  %v2958_v18 = vld [vmem:[%s3512_s12 + $0x108] sm:$0xff] }
 0x20f   : > { %1016 = vmatpush.bf16.msra.mxu3 %v2951_v11  ;;  %1101 = vmatpush.bf16.msrb.mxu0 %v2958_v18 }
 0x210   : > { %v3136_v22 = vpop.eup %3135  ;;  %v2395_v23 = vmul.f32 -1.442695, %v667_v20 }
 0x211   : > { %v675_v24 = vadd.f32 1.0, %v3136_v22 }
 0x212   : > { %3137 = vpow2.f32 %v2395_v23  ;;  %v2941_v23 = vld [vmem:[%s3512_s12 + $0x80] sm:$0xff] }
 0x213   : > { %3139 = vrcp.f32 %v675_v24  ;;  %v688_v34 = vand.u32 2147483648, %v675_v24  ;;  %vm682_vm7 = vweird.f32 %v675_v24  ;;  %v686_v35 = vand.u32 2147483647, %v675_v24  ;;  %1017 = vmatpush.bf16.msra.mxu3 %v2950_v17 }
 0x215   : > { %v689_v41 = vor.u32 1.1754944e-38, %v688_v34  ;;  %vm687_vm10 = vcmp.eq.f32.partialorder %v686_v35, 8.507059e+37 }
 0x218   : > { %v3138_v25 = vpop.eup %3137 }
 0x219   : > { %v3140_v26 = vpop.eup %3139  ;;  %v676_v27 = vadd.f32 1.0, %v3138_v25 }
 0x21a   : > { %v678_v28 = vmul.f32 %v3140_v26, %v675_v24  ;;  %vm683_vm6 = vweird.f32 %v3140_v26  ;;  %v2949_v24 = vld [vmem:[%s3512_s12 + $0xc0] sm:$0xff] }
 0x21b   : > { %3141 = vrcp.f32 %v676_v27  ;;  %vm684_vm8 = vmor %vm682_vm7, %vm683_vm6  ;;  %v703_v37 = vand.u32 2147483648, %v676_v27  ;;  %v701_v40 = vand.u32 2147483647, %v676_v27  ;;  %vm697_vm11 = vweird.f32 %v676_v27  ;;  %1018 = vmatpush.bf16.msra.mxu3 %v2949_v24 }
 0x21c   : > { %v679_v29 = vsub.f32 1.0, %v678_v28 }
 0x21d   : > { %v704_v44 = vor.u32 1.1754944e-38, %v703_v37  ;;  %vm702_vm13 = vcmp.eq.f32.partialorder %v701_v40, 8.507059e+37 }
 0x21e   : > { %v680_v30 = vmul.f32 %v3140_v26, %v679_v29 }
 0x220   : > { %v681_v32 = vadd.f32 %v3140_v26, %v680_v30 }
 0x221   : > { %v3142_v31 = vpop.eup %3141 }
 0x222   : > { %v693_v33 = vmul.f32 %v3142_v31, %v676_v27  ;;  %v685_v38 = vsel %vm684_vm8, %v3140_v26, %v681_v32  ;;  %vm698_vm9 = vweird.f32 %v3142_v31  ;;  %v2957_v26 = vld [vmem:[%s3512_s12 + $0x100] sm:$0xff] }
 0x223   : > { %v690_v43 = vsel %vm687_vm10, %v689_v41, %v685_v38  ;;  %vm699_vm12 = vmor %vm697_vm11, %vm698_vm9  ;;  %1102 = vmatpush.bf16.msrb.mxu0 %v2957_v26 }
 0x224   : > { %v694_v36 = vsub.f32 1.0, %v693_v33  ;;  %v707_v47 = vmul.f32 %v690_v43, %v665_v14 }
 0x226   : > { %v695_v39 = vmul.f32 %v3142_v31, %v694_v36 }
 0x228   : > { %v696_v42 = vadd.f32 %v3142_v31, %v695_v39 }
 0x22a   : > { %v700_v45 = vsel %vm699_vm12, %v3142_v31, %v696_v42 }
 0x22b   : > { %v705_v46 = vsel %vm702_vm13, %v704_v44, %v700_v45 }
 0x22c   : > { %v708_v48 = vmul.f32 %v705_v46, %v667_v20 }
 0x22e   : > { %v709_v49 = vpack.c.bf16 %v708_v48, %v707_v47 }
 0x230   : > { %788 = vmatmul.bf16.vlgmr.msra.gmra.mxu1 %v709_v49  ;;  %v3106_v49 = vld [vmem:[%s3518_s19 + $0x4] ss:$0 sm:$0xff] }
 0x2ad   : > { %v789_v51 = vpop.f32.mrf.mxu1 }
 0x2ae   : > { %v790_v52 = vadd.f32 %v3105_v50, %v789_v51 }
 0x2b0   : > { %v794_v53 = vmul.f32 0.5, %v790_v52 }
 0x2b2   : > { %v3591_v54 = vadd.f32 %v794_v53, %v3558_v19 }
 0x2b4   : > { %798 = vadd.xlane.f32.xlu2 %v3591_v54  ;;  %v804_v55 = vmul.f32 %v3591_v54, %v3591_v54 }
 0x2b5   : > { %v791_v56 = vpop.f32.mrf.mxu1 }
 0x2b6   : > { %v792_v57 = vadd.f32 %v3105_v50, %v791_v56  ;;  %806 = vadd.xlane.f32.xlu0 %v804_v55  ;;  %v3107_v56 = vld [vmem:[%s3518_s19 + $0x5] ss:$0 sm:$0xff] }
 0x2b8   : > { %v795_v58 = vmul.f32 0.5, %v792_v57 }
 0x2ba   : > { %v3597_v59 = vadd.f32 %v795_v58, %v3563_v21  ;;  %v2947_v21 = vld [vmem:[%s3512_s12 + $0xb0] sm:$0xff] }
 0x2bb   : > { %928 = vmatpush.bf16.msra.mxu2 %v2947_v21  ;;  %v1111_v21 = vld [vmem:[%s3797_s3 + $0x10] sm:$0xff] }
 0x2bc   : > { %800 = vadd.xlane.f32.xlu2 %v3597_v59  ;;  %v805_v19 = vmul.f32 %v3597_v59, %v3597_v59 }
 0x2be   : > { %808 = vadd.xlane.f32.xlu1 %v805_v19 }
 0x2bf   : > { %929 = vmatpush.bf16.msra.mxu2 %v2946_v1  ;;  %v3110_v1 = vld [vmem:[%s3518_s19 + $0x7] ss:$0 sm:$0xff] }
 0x2c3   : > { %930 = vmatpush.bf16.msra.mxu2 %v2945_v4 }
 0x2c7   : > { %931 = vmatpush.bf16.msra.mxu2 %v2944_v7 }
 0x2cb   : > { %932 = vmatpush.bf16.msra.mxu2 %v2943_v10 }
 0x2cf   : > { %933 = vmatpush.bf16.msra.mxu2 %v2942_v16 }
 0x2d3   : > { %934 = vmatpush.bf16.msra.mxu2 %v2941_v23 }
 0x327   : > { %v799_v13 = vpop.xlane.xlu2 %798 }
 0x328   : > { %v802_v14 = vmul.f32 0.03125, %v799_v13 }
 0x329   : > { %v807_v15 = vpop.xlane.xlu0 %806 }
 0x32a   : > { %v812_v20 = vmul.f32 %v802_v14, %v802_v14  ;;  %v810_v22 = vmul.f32 0.03125, %v807_v15  ;;  %v816_v46 = vsub.f32 %v3591_v54, %v802_v14 }
 0x32c   : > { %v814_v25 = vsub.f32 %v810_v22, %v812_v20 }
 0x32e   : > { %v818_v27 = vadd.f32 1e-05, %v814_v25 }
 0x32f   : > { %v801_v28 = vpop.xlane.xlu2 %800 }
 0x330   : > { %3143 = vrsqrt.f32 %v818_v27  ;;  %v803_v29 = vmul.f32 0.03125, %v801_v28  ;;  %vm826_vm15 = vweird.f32 %v818_v27 }
 0x331   : > { %v809_v30 = vpop.xlane.xlu1 %808 }
 0x332   : > { %v813_v31 = vmul.f32 %v803_v29, %v803_v29  ;;  %v811_v32 = vmul.f32 0.03125, %v809_v30  ;;  %v817_v51 = vsub.f32 %v3597_v59, %v803_v29  ;;  %v3109_v30 = vld [vmem:[%s3518_s19 + $0x6] ss:$0 sm:$0xff] }
 0x334   : > { %v815_v33 = vsub.f32 %v811_v32, %v813_v31 }
 0x336   : > { %v3144_v34 = vpop.eup %3143  ;;  %v819_v35 = vadd.f32 1e-05, %v815_v33 }
 0x337   : > { %v821_v36 = vmul.f32 %v3144_v34, %v818_v27  ;;  %vm827_vm14 = vweird.f32 %v3144_v34 }
 0x338   : > { %3145 = vrsqrt.f32 %v819_v35  ;;  %vm828_vm0 = vmor %vm826_vm15, %vm827_vm14  ;;  %vm836_vm2 = vweird.f32 %v819_v35 }
 0x339   : > { %v822_v37 = vmul.f32 %v3144_v34, %v821_v36 }
 0x33b   : > { %v823_v38 = vmul.f32 0.5, %v822_v37 }
 0x33d   : > { %v824_v39 = vsub.f32 1.5, %v823_v38 }
 0x33e   : > { %v3146_v40 = vpop.eup %3145 }
 0x33f   : > { %v825_v41 = vmul.f32 %v3144_v34, %v824_v39  ;;  %v831_v42 = vmul.f32 %v3146_v40, %v819_v35  ;;  %vm837_vm1 = vweird.f32 %v3146_v40 }
 0x340   : > { %vm838_vm3 = vmor %vm836_vm2, %vm837_vm1 }
 0x341   : > { %v832_v43 = vmul.f32 %v3146_v40, %v831_v42  ;;  %v829_v44 = vsel %vm828_vm0, %v3144_v34, %v825_v41 }
 0x342   : > { %v840_v48 = vmul.f32 %v829_v44, %v816_v46  ;;  %v3111_v44 = vld [vmem:[%s3796_s2] ss:$0 sm:$0xff] }
 0x343   : > { %v833_v45 = vmul.f32 0.5, %v832_v43  ;;  %v1114_v43 = vpack.c.bf16 %v1112_v63, %v1111_v21 }
 0x344   : > { %v847_v55 = vmul.f32 %v3106_v49, %v840_v48 }
 0x345   : > { %v834_v47 = vsub.f32 1.5, %v833_v45  ;;  %1162 = vmatpush.bf16.msrb.mxu2 %v1114_v43 }
 0x346   : > { %v854_v58 = vadd.f32 %v3107_v56, %v847_v55 }
 0x347   : > { %v835_v50 = vmul.f32 %v3146_v40, %v834_v47 }
 0x349   : > { %v839_v52 = vsel %vm838_vm3, %v3146_v40, %v835_v50  ;;  %v3112_v50 = vld [vmem:[%s3796_s2 + $0x1] ss:$0 sm:$0xff] }
 0x34a   : > { %v841_v53 = vmul.f32 %v839_v52, %v817_v51 }
 0x34c   : > { %v848_v57 = vmul.f32 %v3106_v49, %v841_v53 }
 0x34e   : > { %v855_v19 = vadd.f32 %v3107_v56, %v848_v57  ;;  %v1113_v57 = vpack.c.bf16 %v3646_v3, %v3641_v2 }
 0x350   : > { %v856_v60 = vpack.c.bf16 %v855_v19, %v854_v58  ;;  %1163 = vmatpush.bf16.msrb.mxu2 %v1113_v57 }
 0x352   : > { %935 = vmatmul.bf16.vlgmr.msra.gmra.mxu2 %v856_v60  ;;  %1019 = vmatmul.bf16.vlgmr.msra.gmra.mxu3 %v856_v60 }
 0x353   : > { %1103 = vmatmul.bf16.vlgmr.msrb.gmra.mxu0 %v856_v60 }
 0x354   : > { %1246 = vmatpush.bf16.msra.mxu2 %v1114_v43 }
 0x358   : > { %1247 = vmatpush.bf16.msra.mxu2 %v1113_v57  ;;  %v2986_v57 = vld [vmem:[%s3512_s12 + $0x1e8] sm:$0xff] }
 0x3d0   : > { %v1104_v62 = vpop.f32.mrf.mxu0 }
 0x3d1   : > { %v1105_v0 = vadd.f32 %v3108_v61, %v1104_v62 }
 0x3d3   : > { %v1121_v4 = vmul.f32 %v1111_v21, %v1105_v0  ;;  %v1122_v5 = vmul.f32 %v1112_v63, %v1105_v0  ;;  %v1119_v8 = vmul.f32 %v3641_v2, %v1105_v0  ;;  %v1120_v9 = vmul.f32 %v3646_v3, %v1105_v0 }
 0x3d5   : > { %v1020_v6 = vpop.f32.mrf.mxu3  ;;  %v1170_v7 = vpack.c.bf16 %v1122_v5, %v1121_v4  ;;  %v1169_v15 = vpack.c.bf16 %v1120_v9, %v1119_v8  ;;  %v936_v32 = vpop.f32.mrf.mxu2  ;;  %v2971_v4 = vld [vmem:[%s3512_s12 + $0x170] sm:$0xff]  ;;  %v2970_v5 = vld [vmem:[%s3512_s12 + $0x168] sm:$0xff] }
 0x3d6   : > { %v1021_v10 = vadd.f32 %v3110_v1, %v1020_v6  ;;  %v937_v35 = vadd.f32 %v3109_v30, %v936_v32  ;;  %v2969_v6 = vld [vmem:[%s3512_s12 + $0x160] sm:$0xff]  ;;  %v2967_v8 = vld [vmem:[%s3512_s12 + $0x150] sm:$0xff]  ;;  %v2966_v9 = vld [vmem:[%s3512_s12 + $0x148] sm:$0xff] }
 0x3d7   : > { %1177 = vmatpush.bf16.msrb.mxu3 %v1170_v7  ;;  %v2968_v7 = vld [vmem:[%s3512_s12 + $0x158] sm:$0xff] }
 0x3d8   : > { %v1106_v11 = vpop.f32.mrf.mxu0  ;;  %v1117_v12 = vmul.f32 %v1111_v21, %v1021_v10  ;;  %v1118_v13 = vmul.f32 %v1112_v63, %v1021_v10  ;;  %v1115_v26 = vmul.f32 %v3641_v2, %v1021_v10  ;;  %v1116_v27 = vmul.f32 %v3646_v3, %v1021_v10 }
 0x3d9   : > { %v1107_v14 = vadd.f32 %v3108_v61, %v1106_v11  ;;  %v1123_v38 = vpack.c.bf16 %v937_v35, %v937_v35 }
 0x3da   : > { %v1125_v16 = vpack.c.bf16 %v1118_v13, %v1117_v12  ;;  %v1124_v33 = vpack.c.bf16 %v1116_v27, %v1115_v26  ;;  %v2965_v12 = vld [vmem:[%s3512_s12 + $0x140] sm:$0xff] }
 0x3db   : > { %v1205_v17 = vmul.f32 %v1111_v21, %v1107_v14  ;;  %v1206_v18 = vmul.f32 %v1112_v63, %v1107_v14  ;;  %1178 = vmatpush.bf16.msrb.mxu3 %v1169_v15  ;;  %v1203_v23 = vmul.f32 %v3641_v2, %v1107_v14  ;;  %v1204_v24 = vmul.f32 %v3646_v3, %v1107_v14 }
 0x3dc   : > { %1132 = vmatpush.bf16.xpose.msrb.mxu1 %v1125_v16 }
 0x3dd   : > { %v1022_v20 = vpop.f32.mrf.mxu3  ;;  %v1254_v22 = vpack.c.bf16 %v1206_v18, %v1205_v17  ;;  %v1253_v31 = vpack.c.bf16 %v1204_v24, %v1203_v23  ;;  %v938_v40 = vpop.f32.mrf.mxu2 }
 0x3de   : > { %v1023_v25 = vadd.f32 %v3110_v1, %v1022_v20  ;;  %v939_v41 = vadd.f32 %v3109_v30, %v938_v40 }
 0x3df   : > { %1261 = vmatpush.bf16.msra.mxu3 %v1254_v22 }
 0x3e0   : > { %v1201_v28 = vmul.f32 %v1111_v21, %v1023_v25  ;;  %v1202_v29 = vmul.f32 %v1112_v63, %v1023_v25  ;;  %v1199_v36 = vmul.f32 %v3641_v2, %v1023_v25  ;;  %v1200_v37 = vmul.f32 %v3646_v3, %v1023_v25  ;;  %v2972_v3 = vld [vmem:[%s3512_s12 + $0x178] sm:$0xff] }
 0x3e1   : > { %v1207_v42 = vpack.c.bf16 %v939_v41, %v939_v41  ;;  %1349 = vmatpush.bf16.msra.mxu0 %v2972_v3 }
 0x3e2   : > { %v1209_v34 = vpack.c.bf16 %v1202_v29, %v1201_v28  ;;  %v1208_v39 = vpack.c.bf16 %v1200_v37, %v1199_v36 }
 0x3e3   : > { %1262 = vmatpush.bf16.msra.mxu3 %v1253_v31 }
 0x3e4   : > { %1133 = vmatpush.bf16.xpose.msrb.mxu1 %v1124_v33 }
 0x3e5   : > { %1350 = vmatpush.bf16.msra.mxu0 %v2971_v4  ;;  %v2974_v4 = vld [vmem:[%s3512_s12 + $0x188] sm:$0xff] }
 0x3e9   : > { %1351 = vmatpush.bf16.msra.mxu0 %v2970_v5  ;;  %v2982_v5 = vld [vmem:[%s3512_s12 + $0x1c8] sm:$0xff] }
 0x3eb   : > { %1134 = vmatmul.bf16.vlgmr.msrb.gmra.mxu1 %v1123_v38 }
 0x3ec   : > { %1216 = vmatpush.bf16.xpose.msra.mxu1 %v1209_v34 }
 0x3ed   : > { %1352 = vmatpush.bf16.msra.mxu0 %v2969_v6 }
 0x3f1   : > { %1353 = vmatpush.bf16.msra.mxu0 %v2968_v7  ;;  %v2973_v7 = vld [vmem:[%s3512_s12 + $0x180] sm:$0xff] }
 0x3f4   : > { %1217 = vmatpush.bf16.xpose.msra.mxu1 %v1208_v39 }
 0x3f5   : > { %1354 = vmatpush.bf16.msra.mxu0 %v2967_v8  ;;  %v2981_v8 = vld [vmem:[%s3512_s12 + $0x1c0] sm:$0xff] }
 0x3f9   : > { %1355 = vmatpush.bf16.msra.mxu0 %v2966_v9 }
 0x3fb   : > { %1218 = vmatmul.bf16.vlgmr.msra.gmra.mxu1 %v1207_v42 }
 0x3fd   : > { %1356 = vmatpush.bf16.msra.mxu0 %v2965_v12 }
 0x468   : > { %v1135_v45 = vpop.f32.mrf.mxu1 }
 0x469   : > { %v1139_v46 = vmul.f32 0.35355338, %v1135_v45 }
 0x46b   : > { %v1144_v47 = vadd.f32 %v3111_v44, %v1139_v46  ;;  %v3113_v44 = vld [vmem:[%s3518_s19 + $0x9] ss:$0 sm:$0xff] }
 0x46d   : > { %v1146_v48 = vsel %vm1145_vm4, %v1144_v47, -inf }
 0x46e   : > { %1147 = vmax.xlane.f32.xlu2 %v1146_v48 }
 0x470   : > { %v1137_v49 = vpop.f32.mrf.mxu1 }
 0x478   : > { %v1219_v51 = vpop.f32.mrf.mxu1 }
 0x479   : > { %v1223_v52 = vmul.f32 0.35355338, %v1219_v51 }
 0x47b   : > { %v1229_v53 = vadd.f32 %v3112_v50, %v1223_v52  ;;  %v2980_v52 = vld [vmem:[%s3512_s12 + $0x1b8] sm:$0xff] }
 0x47c   : > { %1501 = vmatpush.bf16.msrb.mxu1 %v2980_v52 }
 0x47d   : > { %v1230_v55 = vsel %vm1145_vm4, %v1229_v53, -inf }
 0x47e   : > { %1231 = vmax.xlane.f32.xlu0 %v1230_v55  ;;  %v2979_v55 = vld [vmem:[%s3512_s12 + $0x1b0] sm:$0xff] }
 0x480   : > { %v1221_v56 = vpop.f32.mrf.mxu1  ;;  %1502 = vmatpush.bf16.msrb.mxu1 %v2979_v55  ;;  %v2995_v55 = vld [vmem:[%s3512_s12 + $0x230] sm:$0xff] }
 0x481   : > { %v2987_v56 = vld [vmem:[%s3512_s12 + $0x1f0] sm:$0xff] }
 0x4e1   : > { %v1148_v58 = vpop.xlane.xlu2 %1147 }
 0x4e2   : > { %v1149_v19 = vsub.f32 %v1144_v47, %v1148_v58  ;;  %v2977_v58 = vld [vmem:[%s3512_s12 + $0x1a0] sm:$0xff] }
 0x4e4   : > { %v1150_v60 = vmul.f32 1.442695, %v1149_v19  ;;  %v2985_v19 = vld [vmem:[%s3512_s12 + $0x1e0] sm:$0xff] }
 0x4e6   : > { %3147 = vpow2.f32 %v1150_v60  ;;  %v2976_v60 = vld [vmem:[%s3512_s12 + $0x198] sm:$0xff] }
 0x4ec   : > { %v3148_v61 = vpop.eup %3147 }
 0x4ed   : > { %v1152_v62 = vpack.c.bf16 %v3148_v61, %v3148_v61  ;;  %v2984_v61 = vld [vmem:[%s3512_s12 + $0x1d8] sm:$0xff] }
 0x4ef   : > { %2594 = vmatmul.msk.bf16.vlgmr.msrb.gmra.mxu2 %vm1145_vm4, %v1152_v62  ;;  %2595 = vmatmul.msk.bf16.vlgmr.msrb.gmra.mxu3 %vm1145_vm4, %v1152_v62 }
 0x4f1   : > { %v1232_v21 = vpop.xlane.xlu0 %1231 }
 0x4f2   : > { %v1233_v63 = vsub.f32 %v1229_v53, %v1232_v21  ;;  %v2988_v53 = vld [vmem:[%s3512_s12 + $0x1f8] sm:$0xff]  ;;  %v2975_v21 = vld [vmem:[%s3512_s12 + $0x190] sm:$0xff] }
 0x4f3   : > { %1585 = vmatpush.bf16.msrb.mxu2 %v2988_v53 }
 0x4f4   : > { %v1234_v0 = vmul.f32 1.442695, %v1233_v63  ;;  %v2983_v63 = vld [vmem:[%s3512_s12 + $0x1d0] sm:$0xff] }
 0x4f6   : > { %3149 = vpow2.f32 %v1234_v0 }
 0x4f7   : > { %1586 = vmatpush.bf16.msrb.mxu2 %v2987_v56 }
 0x4fb   : > { %1587 = vmatpush.bf16.msrb.mxu2 %v2986_v57 }
 0x4fc   : > { %v3150_v1 = vpop.eup %3149 }
 0x4fd   : > { %v1236_v2 = vpack.c.bf16 %v3150_v1, %v3150_v1 }
 0x4ff   : > { %2597 = vmatmul.msk.bf16.vlgmr.msra.gmra.mxu2 %vm1145_vm4, %v1236_v2  ;;  %2598 = vmatmul.msk.bf16.vlgmr.msra.gmra.mxu3 %vm1145_vm4, %v1236_v2 }
 0x500   : > { %1588 = vmatpush.bf16.msrb.mxu2 %v2985_v19 }
 0x504   : > { %1589 = vmatpush.bf16.msrb.mxu2 %v2984_v61  ;;  %v1639_v61 = vlaneseq }
 0x508   : > { %1590 = vmatpush.bf16.msrb.mxu2 %v2983_v63 }
 0x50c   : > { %1591 = vmatpush.bf16.msrb.mxu2 %v2982_v5 }
 0x510   : > { %1592 = vmatpush.bf16.msrb.mxu2 %v2981_v8 }
 0x572   : > { %v1165_v10 = vpop.f32.mrf.mxu2  ;;  %v1180_v11 = vpop.f32.mrf.mxu3 }
 0x573   : > { %3151 = vrcp.f32 %v1165_v10  ;;  %v1195_v28 = vand.u32 2147483648, %v1165_v10  ;;  %vm1189_vm6 = vweird.f32 %v1165_v10  ;;  %v1193_v29 = vand.u32 2147483647, %v1165_v10 }
 0x575   : > { %v1196_v35 = vor.u32 1.1754944e-38, %v1195_v28  ;;  %vm1194_vm9 = vcmp.eq.f32.partialorder %v1193_v29, 8.507059e+37 }
 0x579   : > { %v3152_v15 = vpop.eup %3151 }
 0x57a   : > { %v1167_v13 = vpop.f32.mrf.mxu2  ;;  %v1182_v14 = vpop.f32.mrf.mxu3  ;;  %v1185_v16 = vmul.f32 %v3152_v15, %v1165_v10  ;;  %vm1190_vm5 = vweird.f32 %v3152_v15 }
 0x57b   : > { %vm1191_vm7 = vmor %vm1189_vm6, %vm1190_vm5 }
 0x57c   : > { %v1186_v17 = vsub.f32 1.0, %v1185_v16 }
 0x57e   : > { %v1187_v22 = vmul.f32 %v3152_v15, %v1186_v17 }
 0x580   : > { %v1188_v24 = vadd.f32 %v3152_v15, %v1187_v22 }
 0x582   : > { %v1249_v18 = vpop.f32.mrf.mxu2  ;;  %v1264_v20 = vpop.f32.mrf.mxu3  ;;  %v1192_v32 = vsel %vm1191_vm7, %v3152_v15, %v1188_v24 }
 0x583   : > { %3153 = vrcp.f32 %v1249_v18  ;;  %v1279_v31 = vand.u32 2147483648, %v1249_v18  ;;  %v1277_v34 = vand.u32 2147483647, %v1249_v18  ;;  %vm1273_vm10 = vweird.f32 %v1249_v18 }
 0x584   : > { %v1197_v37 = vsel %vm1194_vm9, %v1196_v35, %v1192_v32 }
 0x585   : > { %v1280_v38 = vor.u32 1.1754944e-38, %v1279_v31  ;;  %vm1278_vm12 = vcmp.eq.f32.partialorder %v1277_v34, 8.507059e+37  ;;  %v1198_v41 = vmul.f32 %v1197_v37, %v1180_v11 }
 0x589   : > { %v3154_v23 = vpop.eup %3153 }
 0x58a   : > { %v1269_v25 = vmul.f32 %v3154_v23, %v1249_v18  ;;  %v1251_v26 = vpop.f32.mrf.mxu2  ;;  %v1266_v27 = vpop.f32.mrf.mxu3  ;;  %vm1274_vm8 = vweird.f32 %v3154_v23 }
 0x58b   : > { %vm1275_vm11 = vmor %vm1273_vm10, %vm1274_vm8 }
 0x58c   : > { %v1270_v30 = vsub.f32 1.0, %v1269_v25 }
 0x58e   : > { %v1271_v33 = vmul.f32 %v3154_v23, %v1270_v30 }
 0x590   : > { %v1272_v36 = vadd.f32 %v3154_v23, %v1271_v33  ;;  %v3114_v33 = vld [vmem:[%s3518_s19 + $0xa] ss:$0 sm:$0xff] }
 0x592   : > { %v1276_v39 = vsel %vm1275_vm11, %v3154_v23, %v1272_v36 }
 0x593   : > { %v1281_v40 = vsel %vm1278_vm12, %v1280_v38, %v1276_v39  ;;  %v3115_v39 = vld [vmem:[%s3518_s19 + $0xb] ss:$0 sm:$0xff] }
 0x594   : > { %v1282_v42 = vmul.f32 %v1281_v40, %v1264_v20 }
 0x596   : > { %v1283_v43 = vpack.c.bf16 %v1282_v42, %v1198_v41 }
 0x598   : > { %1357 = vmatmul.bf16.vlgmr.msra.gmra.mxu0 %v1283_v43 }
 0x615   : > { %v1358_v45 = vpop.f32.mrf.mxu0 }
 0x616   : > { %v1363_v46 = vadd.f32 %v1358_v45, %v3591_v54 }
 0x618   : > { %v3681_v47 = vadd.f32 %v3113_v44, %v1363_v46 }
 0x61a   : > { %1372 = vadd.xlane.f32.xlu1 %v3681_v47  ;;  %v1378_v48 = vmul.f32 %v3681_v47, %v3681_v47 }
 0x61c   : > { %1380 = vadd.xlane.f32.xlu0 %v1378_v48 }
 0x61d   : > { %v1360_v49 = vpop.f32.mrf.mxu0 }
 0x61e   : > { %v1364_v50 = vadd.f32 %v1360_v49, %v3597_v59  ;;  %v2978_v59 = vld [vmem:[%s3512_s12 + $0x1a8] sm:$0xff] }
 0x61f   : > { %1503 = vmatpush.bf16.msrb.mxu1 %v2978_v59  ;;  %v2994_v59 = vld [vmem:[%s3512_s12 + $0x228] sm:$0xff] }
 0x620   : > { %v3687_v51 = vadd.f32 %v3113_v44, %v1364_v50  ;;  %v3117_v44 = vld [vmem:[%s3518_s19 + $0xd] ss:$0 sm:$0xff] }
 0x622   : > { %1374 = vadd.xlane.f32.xlu2 %v3687_v51  ;;  %v1379_v54 = vmul.f32 %v3687_v51, %v3687_v51 }
 0x623   : > { %1504 = vmatpush.bf16.msrb.mxu1 %v2977_v58  ;;  %v2993_v58 = vld [vmem:[%s3512_s12 + $0x220] sm:$0xff] }
 0x624   : > { %1382 = vadd.xlane.f32.xlu1 %v1379_v54  ;;  %v2996_v54 = vld [vmem:[%s3512_s12 + $0x238] sm:$0xff] }
 0x625   : > { %1812 = vmatpush.bf16.msrb.mxu3 %v2996_v54 }
 0x627   : > { %1505 = vmatpush.bf16.msrb.mxu1 %v2976_v60 }
 0x629   : > { %1813 = vmatpush.bf16.msrb.mxu3 %v2995_v55 }
 0x62b   : > { %1506 = vmatpush.bf16.msrb.mxu1 %v2975_v21 }
 0x62d   : > { %1814 = vmatpush.bf16.msrb.mxu3 %v2994_v59 }
 0x62f   : > { %1507 = vmatpush.bf16.msrb.mxu1 %v2974_v4 }
 0x631   : > { %1815 = vmatpush.bf16.msrb.mxu3 %v2993_v58 }
 0x633   : > { %1508 = vmatpush.bf16.msrb.mxu1 %v2973_v7  ;;  %v2991_v7 = vld [vmem:[%s3512_s12 + $0x210] sm:$0xff] }
 0x68d   : > { %v1373_v62 = vpop.xlane.xlu1 %1372 }
 0x68e   : > { %v1376_v0 = vmul.f32 0.03125, %v1373_v62 }
 0x68f   : > { %v1381_v1 = vpop.xlane.xlu0 %1380 }
 0x690   : > { %v1386_v2 = vmul.f32 %v1376_v0, %v1376_v0  ;;  %v1384_v3 = vmul.f32 0.03125, %v1381_v1  ;;  %v1390_v30 = vsub.f32 %v3681_v47, %v1376_v0  ;;  %v2992_v0 = vld [vmem:[%s3512_s12 + $0x218] sm:$0xff]  ;;  %v3116_v1 = vld [vmem:[%s3518_s19 + $0xc] ss:$0 sm:$0xff] }
 0x691   : > { %1816 = vmatpush.bf16.msrb.mxu3 %v2992_v0 }
 0x692   : > { %v1388_v6 = vsub.f32 %v1384_v3, %v1386_v2  ;;  %v1640_v3 = vshrl.u32 %v1639_v61, 7 }
 0x694   : > { %v1392_v9 = vadd.f32 1e-05, %v1388_v6  ;;  %vm1644_vm6 = vcmp.ge.s32.totalorder %v1640_v3, 1  ;;  %vm1647_vm8 = vcmp.lt.s32.totalorder %v1640_v3, 7 }
 0x695   : > { %v1375_v10 = vpop.xlane.xlu2 %1374  ;;  %1817 = vmatpush.bf16.msrb.mxu3 %v2991_v7 }
 0x696   : > { %3155 = vrsqrt.f32 %v1392_v9  ;;  %v1377_v11 = vmul.f32 0.03125, %v1375_v10  ;;  %vm1400_vm14 = vweird.f32 %v1392_v9 }
 0x697   : > { %v1383_v12 = vpop.xlane.xlu1 %1382 }
 0x698   : > { %v1387_v13 = vmul.f32 %v1377_v11, %v1377_v11  ;;  %v1385_v14 = vmul.f32 0.03125, %v1383_v12  ;;  %v1391_v35 = vsub.f32 %v3687_v51, %v1377_v11 }
 0x69a   : > { %v1389_v15 = vsub.f32 %v1385_v14, %v1387_v13 }
 0x69c   : > { %v3156_v16 = vpop.eup %3155  ;;  %v1393_v17 = vadd.f32 1e-05, %v1389_v15 }
 0x69d   : > { %v1395_v18 = vmul.f32 %v3156_v16, %v1392_v9  ;;  %vm1401_vm13 = vweird.f32 %v3156_v16 }
 0x69e   : > { %3157 = vrsqrt.f32 %v1393_v17  ;;  %vm1402_vm15 = vmor %vm1400_vm14, %vm1401_vm13  ;;  %vm1410_vm1 = vweird.f32 %v1393_v17 }
 0x69f   : > { %v1396_v20 = vmul.f32 %v3156_v16, %v1395_v18 }
 0x6a1   : > { %v1397_v22 = vmul.f32 0.5, %v1396_v20  ;;  %v3363_v20 = vmov 0.0  }
 0x6a3   : > { %v1398_v23 = vsub.f32 1.5, %v1397_v22  ;;  %v2750_v22 = vsel %vm1644_vm6, 1.0, %v3363_v20 }
 0x6a4   : > { %v3158_v24 = vpop.eup %3157 }
 0x6a5   : > { %v1399_v25 = vmul.f32 %v3156_v16, %v1398_v23  ;;  %v1405_v26 = vmul.f32 %v3158_v24, %v1393_v17  ;;  %vm1411_vm0 = vweird.f32 %v3158_v24  ;;  %v2751_v23 = vsel %vm1647_vm8, 1.0, %v3363_v20 }
 0x6a6   : > { %vm1412_vm2 = vmor %vm1410_vm1, %vm1411_vm0 }
 0x6a7   : > { %v1406_v27 = vmul.f32 %v3158_v24, %v1405_v26  ;;  %v1403_v28 = vsel %vm1402_vm15, %v3156_v16, %v1399_v25  ;;  %v2990_v16 = vld [vmem:[%s3512_s12 + $0x208] sm:$0xff] }
 0x6a8   : > { %v1414_v32 = vmul.f32 %v1403_v28, %v1390_v30  ;;  %v3118_v28 = vld [vmem:[%s3518_s19 + $0x18] ss:$0 sm:$0xff]  ;;  %1818 = vmatpush.bf16.msrb.mxu3 %v2990_v16 }
 0x6a9   : > { %v1407_v29 = vmul.f32 0.5, %v1406_v27 }
 0x6aa   : > { %v1421_v38 = vmul.f32 %v3114_v33, %v1414_v32 }
 0x6ab   : > { %v1408_v31 = vsub.f32 1.5, %v1407_v29  ;;  %v3119_v29 = vld [vmem:[%s3518_s19 + $0x19] ss:$0 sm:$0xff] }
 0x6ac   : > { %v1428_v41 = vadd.f32 %v3115_v39, %v1421_v38 }
 0x6ad   : > { %v1409_v34 = vmul.f32 %v3158_v24, %v1408_v31  ;;  %v2989_v31 = vld [vmem:[%s3512_s12 + $0x200] sm:$0xff] }
 0x6ae   : > { %1819 = vmatpush.bf16.msrb.mxu3 %v2989_v31 }
 0x6af   : > { %v1413_v36 = vsel %vm1412_vm2, %v3158_v24, %v1409_v34  ;;  %v3120_v34 = vld [vmem:[%s3518_s19 + $0x1a] ss:$0 sm:$0xff] }
 0x6b0   : > { %v1415_v37 = vmul.f32 %v1413_v36, %v1391_v35 }
 0x6b2   : > { %v1422_v40 = vmul.f32 %v3114_v33, %v1415_v37 }
 0x6b4   : > { %v1429_v42 = vadd.f32 %v3115_v39, %v1422_v40 }
 0x6b6   : > { %v1430_v43 = vpack.c.bf16 %v1429_v42, %v1428_v41 }
 0x6b8   : > { %1509 = vmatmul.bf16.vlgmr.msrb.gmra.mxu1 %v1430_v43  ;;  %1593 = vmatmul.bf16.vlgmr.msrb.gmra.mxu2 %v1430_v43 }
 0x735   : > { %v1510_v21 = vpop.f32.mrf.mxu1 }
 0x736   : > { %v1511_v9 = vadd.f32 %v3116_v1, %v1510_v21 }
 0x73b   : > { %v1594_v45 = vpop.f32.mrf.mxu2 }
 0x73c   : > { %v1595_v46 = vadd.f32 %v3117_v44, %v1594_v45 }
 0x73d   : > { %v1512_v25 = vpop.f32.mrf.mxu1 }
 0x73e   : > { %v2748_v48 = vmul.f32 -1.442695, %v1595_v46  ;;  %v1513_v35 = vadd.f32 %v3116_v1, %v1512_v25 }
 0x740   : > { %3159 = vpow2.f32 %v2748_v48 }
 0x743   : > { %v1596_v49 = vpop.f32.mrf.mxu2 }
 0x744   : > { %v1597_v50 = vadd.f32 %v3117_v44, %v1596_v49  ;;  %v3121_v44 = vld [vmem:[%s3518_s19 + $0xe] ss:$0 sm:$0xff]  ;;  %v3122_v49 = vld [vmem:[%s3518_s19 + $0xf] ss:$0 sm:$0xff] }
 0x746   : > { %v3160_v52 = vpop.eup %3159  ;;  %v2749_v53 = vmul.f32 -1.442695, %v1597_v50 }
 0x747   : > { %v1605_v56 = vadd.f32 1.0, %v3160_v52 }
 0x748   : > { %3161 = vpow2.f32 %v2749_v53  ;;  %v3123_v53 = vld [vmem:[%s3518_s19 + $0x10] ss:$0 sm:$0xff] }
 0x749   : > { %3163 = vrcp.f32 %v1605_v56  ;;  %v1618_v2 = vand.u32 2147483648, %v1605_v56  ;;  %v1616_v5 = vand.u32 2147483647, %v1605_v56  ;;  %vm1612_vm4 = vweird.f32 %v1605_v56 }
 0x74b   : > { %v1619_v10 = vor.u32 1.1754944e-38, %v1618_v2  ;;  %vm1617_vm7 = vcmp.eq.f32.partialorder %v1616_v5, 8.507059e+37 }
 0x74e   : > { %v3162_v57 = vpop.eup %3161 }
 0x74f   : > { %v3164_v19 = vpop.eup %3163  ;;  %v1606_v60 = vadd.f32 1.0, %v3162_v57 }
 0x750   : > { %v1608_v62 = vmul.f32 %v3164_v19, %v1605_v56  ;;  %vm1613_vm3 = vweird.f32 %v3164_v19 }
 0x751   : > { %3165 = vrcp.f32 %v1606_v60  ;;  %vm1614_vm5 = vmor %vm1612_vm4, %vm1613_vm3  ;;  %v1631_v17 = vand.u32 2147483647, %v1606_v60  ;;  %v1633_v18 = vand.u32 2147483648, %v1606_v60  ;;  %vm1627_vm10 = vweird.f32 %v1606_v60 }
 0x752   : > { %v1609_v63 = vsub.f32 1.0, %v1608_v62 }
 0x753   : > { %v1634_v36 = vor.u32 1.1754944e-38, %v1633_v18  ;;  %vm1632_vm12 = vcmp.eq.f32.partialorder %v1631_v17, 8.507059e+37 }
 0x754   : > { %v1610_v4 = vmul.f32 %v3164_v19, %v1609_v63 }
 0x756   : > { %v1611_v6 = vadd.f32 %v3164_v19, %v1610_v4 }
 0x757   : > { %v3166_v8 = vpop.eup %3165 }
 0x758   : > { %v1615_v11 = vsel %vm1614_vm5, %v3164_v19, %v1611_v6  ;;  %v1623_v12 = vmul.f32 %v3166_v8, %v1606_v60  ;;  %vm1628_vm9 = vweird.f32 %v3166_v8 }
 0x759   : > { %v1620_v13 = vsel %vm1617_vm7, %v1619_v10, %v1615_v11  ;;  %vm1629_vm11 = vmor %vm1627_vm10, %vm1628_vm9 }
 0x75a   : > { %v1637_v14 = vmul.f32 %v1620_v13, %v1511_v9  ;;  %v1624_v15 = vsub.f32 1.0, %v1623_v12 }
 0x75c   : > { %v1657_v24 = vrot.slane %v1637_v14, 7  ;;  %v1625_v26 = vmul.f32 %v3166_v8, %v1624_v15  ;;  %v1659_v27 = vrot.slane %v1637_v14, 1  ;;  %v1668_v39 = vmul.f32 %v3119_v29, %v1637_v14 }
 0x75e   : > { %v1626_v30 = vadd.f32 %v3166_v8, %v1625_v26  ;;  %v1658_v32 = vmul.f32 %v2750_v22, %v1657_v24  ;;  %v1660_v33 = vmul.f32 %v2751_v23, %v1659_v27 }
 0x760   : > { %v1630_v37 = vsel %vm1629_vm11, %v3166_v8, %v1626_v30  ;;  %v1664_v38 = vmul.f32 %v3118_v28, %v1658_v32  ;;  %v1673_v43 = vmul.f32 %v3120_v34, %v1660_v33  ;;  %v3124_v30 = vld [vmem:[%s3518_s19 + $0x11] ss:$0 sm:$0xff] }
 0x761   : > { %v1635_v40 = vsel %vm1632_vm12, %v1634_v36, %v1630_v37 }
 0x762   : > { %v1638_v41 = vmul.f32 %v1635_v40, %v1513_v35  ;;  %v1669_v42 = vadd.f32 %v1668_v39, %v1664_v38  ;;  %v3004_v38 = vld [vmem:[%s3512_s12 + $0x278] sm:$0xff]  ;;  %v3003_v39 = vld [vmem:[%s3512_s12 + $0x270] sm:$0xff]  ;;  %v3002_v40 = vld [vmem:[%s3512_s12 + $0x268] sm:$0xff] }
 0x763   : > { %1964 = vmatpush.bf16.msrb.mxu0 %v3004_v38 }
 0x764   : > { %v1676_v45 = vrot.slane %v1638_v41, 7  ;;  %v1674_v46 = vadd.f32 %v1673_v43, %v1669_v42  ;;  %v1678_v48 = vrot.slane %v1638_v41, 1  ;;  %v1681_v56 = vmul.f32 %v3119_v29, %v1638_v41  ;;  %v3001_v41 = vld [vmem:[%s3512_s12 + $0x260] sm:$0xff]  ;;  %v2999_v43 = vld [vmem:[%s3512_s12 + $0x250] sm:$0xff] }
 0x766   : > { %v1677_v50 = vmul.f32 %v2750_v22, %v1676_v45  ;;  %v1679_v54 = vmul.f32 %v2751_v23, %v1678_v48  ;;  %v1690_v52 = vadd.f32 %v3121_v44, %v1674_v46 }
 0x767   : > { %1965 = vmatpush.bf16.msrb.mxu0 %v3003_v39 }
 0x768   : > { %v1680_v55 = vmul.f32 %v3118_v28, %v1677_v50  ;;  %v1697_v59 = vmul.f32 %v3122_v49, %v1690_v52  ;;  %v1683_v58 = vmul.f32 %v3120_v34, %v1679_v54  ;;  %v2997_v54 = vld [vmem:[%s3512_s12 + $0x240] sm:$0xff] }
 0x76a   : > { %v1682_v57 = vadd.f32 %v1681_v56, %v1680_v55  ;;  %v1704_v19 = vadd.f32 %v3123_v53, %v1697_v59 }
 0x76b   : > { %1966 = vmatpush.bf16.msrb.mxu0 %v3002_v40 }
 0x76c   : > { %v1684_v60 = vadd.f32 %v1683_v58, %v1682_v57  ;;  %v2758_v61 = vmul.f32 -1.442695, %v1704_v19 }
 0x76e   : > { %v1691_v62 = vadd.f32 %v3121_v44, %v1684_v60  ;;  %3167 = vpow2.f32 %v2758_v61 }
 0x76f   : > { %1967 = vmatpush.bf16.msrb.mxu0 %v3001_v41 }
 0x770   : > { %v1698_v21 = vmul.f32 %v3122_v49, %v1691_v62  ;;  %v2998_v49 = vld [vmem:[%s3512_s12 + $0x248] sm:$0xff] }
 0x772   : > { %v1705_v63 = vadd.f32 %v3123_v53, %v1698_v21 }
 0x774   : > { %v3168_v0 = vpop.eup %3167  ;;  %v2759_v1 = vmul.f32 -1.442695, %v1705_v63 }
 0x775   : > { %v1712_v2 = vadd.f32 1.0, %v3168_v0 }
 0x776   : > { %3169 = vpow2.f32 %v2759_v1 }
 0x777   : > { %3171 = vrcp.f32 %v1712_v2  ;;  %v1725_v12 = vand.u32 2147483648, %v1712_v2  ;;  %vm1719_vm14 = vweird.f32 %v1712_v2  ;;  %v1723_v13 = vand.u32 2147483647, %v1712_v2 }
 0x779   : > { %v1726_v20 = vor.u32 1.1754944e-38, %v1725_v12  ;;  %vm1724_vm1 = vcmp.eq.f32.partialorder %v1723_v13, 8.507059e+37 }
 0x77c   : > { %v3170_v3 = vpop.eup %3169 }
 0x77d   : > { %v3172_v4 = vpop.eup %3171  ;;  %v1713_v5 = vadd.f32 1.0, %v3170_v3 }
 0x77e   : > { %v1715_v6 = vmul.f32 %v3172_v4, %v1712_v2  ;;  %vm1720_vm13 = vweird.f32 %v3172_v4 }
 0x77f   : > { %3173 = vrcp.f32 %v1713_v5  ;;  %vm1721_vm15 = vmor %vm1719_vm14, %vm1720_vm13  ;;  %v1740_v15 = vand.u32 2147483648, %v1713_v5  ;;  %v1738_v18 = vand.u32 2147483647, %v1713_v5  ;;  %vm1734_vm2 = vweird.f32 %v1713_v5 }
 0x780   : > { %v1716_v7 = vsub.f32 1.0, %v1715_v6 }
 0x781   : > { %v1741_v24 = vor.u32 1.1754944e-38, %v1740_v15  ;;  %vm1739_vm4 = vcmp.eq.f32.partialorder %v1738_v18, 8.507059e+37  ;;  %v3126_v15 = vld [vmem:[%s3518_s19 + $0x13] ss:$0 sm:$0xff] }
 0x782   : > { %v1717_v8 = vmul.f32 %v3172_v4, %v1716_v7 }
 0x784   : > { %v1718_v10 = vadd.f32 %v3172_v4, %v1717_v8 }
 0x785   : > { %v3174_v9 = vpop.eup %3173 }
 0x786   : > { %v1730_v11 = vmul.f32 %v3174_v9, %v1713_v5  ;;  %v1722_v16 = vsel %vm1721_vm15, %v3172_v4, %v1718_v10  ;;  %vm1735_vm0 = vweird.f32 %v3174_v9 }
 0x787   : > { %v1727_v23 = vsel %vm1724_vm1, %v1726_v20, %v1722_v16  ;;  %vm1736_vm3 = vmor %vm1734_vm2, %vm1735_vm0 }
 0x788   : > { %v1731_v14 = vsub.f32 1.0, %v1730_v11  ;;  %v1744_v27 = vmul.f32 %v1727_v23, %v1704_v19  ;;  %v3011_v23 = vld [vmem:[%s3512_s12 + $0x2b0] sm:$0xff] }
 0x78a   : > { %v1732_v17 = vmul.f32 %v3174_v9, %v1731_v14 }
 0x78c   : > { %v1733_v22 = vadd.f32 %v3174_v9, %v1732_v17 }
 0x78e   : > { %v1737_v25 = vsel %vm1736_vm3, %v3174_v9, %v1733_v22  ;;  %v3125_v9 = vld [vmem:[%s3518_s19 + $0x12] ss:$0 sm:$0xff]  ;;  %v3012_v22 = vld [vmem:[%s3512_s12 + $0x2b8] sm:$0xff] }
 0x78f   : > { %v1742_v26 = vsel %vm1739_vm4, %v1741_v24, %v1737_v25  ;;  %2089 = vmatpush.bf16.msra.mxu1 %v3012_v22  ;;  %v3010_v24 = vld [vmem:[%s3512_s12 + $0x2a8] sm:$0xff]  ;;  %v3009_v25 = vld [vmem:[%s3512_s12 + $0x2a0] sm:$0xff] }
 0x790   : > { %v1745_v28 = vmul.f32 %v1742_v26, %v1705_v63  ;;  %v3008_v26 = vld [vmem:[%s3512_s12 + $0x298] sm:$0xff] }
 0x792   : > { %v1746_v29 = vpack.c.bf16 %v1745_v28, %v1744_v27  ;;  %v3127_v27 = vld [vmem:[%s3518_s19 + $0x14] ss:$0 sm:$0xff] }
 0x793   : > { %2090 = vmatpush.bf16.msra.mxu1 %v3011_v23 }
 0x794   : > { %1820 = vmatmul.bf16.vlgmr.msrb.gmra.mxu3 %v1746_v29  ;;  %v3007_v29 = vld [vmem:[%s3512_s12 + $0x290] sm:$0xff] }
 0x797   : > { %2091 = vmatpush.bf16.msra.mxu1 %v3010_v24 }
 0x79b   : > { %2092 = vmatpush.bf16.msra.mxu1 %v3009_v25 }
 0x79f   : > { %2093 = vmatpush.bf16.msra.mxu1 %v3008_v26 }
 0x7a3   : > { %2094 = vmatpush.bf16.msra.mxu1 %v3007_v29 }
 0x817   : > { %v1821_v31 = vpop.f32.mrf.mxu3 }
 0x818   : > { %v1826_v32 = vadd.f32 %v1821_v31, %v3681_v47 }
 0x81a   : > { %v3730_v33 = vadd.f32 %v3124_v30, %v1826_v32  ;;  %v3006_v32 = vld [vmem:[%s3512_s12 + $0x288] sm:$0xff] }
 0x81b   : > { %2095 = vmatpush.bf16.msra.mxu1 %v3006_v32 }
 0x81c   : > { %1835 = vadd.xlane.f32.xlu2 %v3730_v33  ;;  %v1841_v34 = vmul.f32 %v3730_v33, %v3730_v33 }
 0x81e   : > { %1843 = vadd.xlane.f32.xlu1 %v1841_v34 }
 0x81f   : > { %v1823_v35 = vpop.f32.mrf.mxu3 }
 0x820   : > { %v1827_v36 = vadd.f32 %v1823_v35, %v3687_v51  ;;  %v3000_v51 = vld [vmem:[%s3512_s12 + $0x258] sm:$0xff]  ;;  %v3005_v35 = vld [vmem:[%s3512_s12 + $0x280] sm:$0xff]  ;;  %s2169_s12 = sadd.s32 1, %s3348_s30  ;;  %s3819_s30 = sld [smem:[#allocation15_spill]] }
 0x821   : > { %1968 = vmatpush.bf16.msrb.mxu0 %v3000_v51  ;;  %2096 = vmatpush.bf16.msra.mxu1 %v3005_v35  ;;  %s3766_s10 = sld [smem:[#allocation3 + %s2169_s12]]  ;;  %v3129_v35 = vld [vmem:[%s3518_s19 + $0x16] ss:$0 sm:$0xff] }
 0x822   : > { %v3736_v37 = vadd.f32 %v3124_v30, %v1827_v36 }
 0x824   : > { %1837 = vadd.xlane.f32.xlu0 %v3736_v37  ;;  %v1842_v47 = vmul.f32 %v3736_v37, %v3736_v37 }
 0x825   : > { %1969 = vmatpush.bf16.msrb.mxu0 %v2999_v43 }
 0x826   : > { %1845 = vadd.xlane.f32.xlu2 %v1842_v47  ;;  %s3821_s16 = sadd.s32 4294967295, %s3819_s30  }
 0x827   : > { %p3042_p2 = scmp.eq.s32.totalorder %s3821_s16, 1 }
 0x829   : > { %1970 = vmatpush.bf16.msrb.mxu0 %v2998_v49 }
 0x82d   : > { %1971 = vmatpush.bf16.msrb.mxu0 %v2997_v54 }
 0x88f   : > { %v1836_v42 = vpop.xlane.xlu2 %1835 }
 0x890   : > { %v1839_v44 = vmul.f32 0.03125, %v1836_v42 }
 0x891   : > { %v1844_v45 = vpop.xlane.xlu1 %1843 }
 0x892   : > { %v1849_v46 = vmul.f32 %v1839_v44, %v1839_v44  ;;  %v1847_v48 = vmul.f32 0.03125, %v1844_v45  ;;  %v1853_v6 = vsub.f32 %v3730_v33, %v1839_v44 }
 0x894   : > { %v1851_v50 = vsub.f32 %v1847_v48, %v1849_v46 }
 0x896   : > { %v1855_v52 = vadd.f32 1e-05, %v1851_v50 }
 0x897   : > { %v1838_v53 = vpop.xlane.xlu0 %1837 }
 0x898   : > { %3175 = vrsqrt.f32 %v1855_v52  ;;  %v1840_v55 = vmul.f32 0.03125, %v1838_v53  ;;  %vm1863_vm6 = vweird.f32 %v1855_v52 }
 0x899   : > { %v1846_v56 = vpop.xlane.xlu2 %1845 }
 0x89a   : > { %v1850_v59 = vmul.f32 %v1840_v55, %v1840_v55  ;;  %v1848_v57 = vmul.f32 0.03125, %v1846_v56  ;;  %v1854_v11 = vsub.f32 %v3736_v37, %v1840_v55 }
 0x89c   : > { %v1852_v58 = vsub.f32 %v1848_v57, %v1850_v59 }
 0x89e   : > { %v3176_v19 = vpop.eup %3175  ;;  %v1856_v60 = vadd.f32 1e-05, %v1852_v58 }
 0x89f   : > { %v1858_v61 = vmul.f32 %v3176_v19, %v1855_v52  ;;  %vm1864_vm5 = vweird.f32 %v3176_v19 }
 0x8a0   : > { %3177 = vrsqrt.f32 %v1856_v60  ;;  %vm1865_vm7 = vmor %vm1863_vm6, %vm1864_vm5  ;;  %vm1873_vm9 = vweird.f32 %v1856_v60 }
 0x8a1   : > { %v1859_v62 = vmul.f32 %v3176_v19, %v1858_v61 }
 0x8a3   : > { %v1860_v21 = vmul.f32 0.5, %v1859_v62 }
 0x8a5   : > { %v1861_v63 = vsub.f32 1.5, %v1860_v21 }
 0x8a6   : > { %v3178_v0 = vpop.eup %3177 }
 0x8a7   : > { %v1862_v1 = vmul.f32 %v3176_v19, %v1861_v63  ;;  %v1868_v2 = vmul.f32 %v3178_v0, %v1856_v60  ;;  %vm1874_vm8 = vweird.f32 %v3178_v0 }
 0x8a8   : > { %vm1875_vm10 = vmor %vm1873_vm9, %vm1874_vm8 }
 0x8a9   : > { %v1869_v3 = vmul.f32 %v3178_v0, %v1868_v2  ;;  %v1866_v4 = vsel %vm1865_vm7, %v3176_v19, %v1862_v1 }
 0x8aa   : > { %v1877_v8 = vmul.f32 %v1866_v4, %v1853_v6 }
 0x8ab   : > { %v1870_v5 = vmul.f32 0.5, %v1869_v3 }
 0x8ac   : > { %v1884_v14 = vmul.f32 %v3125_v9, %v1877_v8 }
 0x8ad   : > { %v1871_v7 = vsub.f32 1.5, %v1870_v5 }
 0x8ae   : > { %v1891_v17 = vadd.f32 %v3126_v15, %v1884_v14 }
 0x8af   : > { %v1872_v10 = vmul.f32 %v3178_v0, %v1871_v7 }
 0x8b1   : > { %v1876_v12 = vsel %vm1875_vm10, %v3178_v0, %v1872_v10  ;;  %v3128_v0 = vld [vmem:[%s3518_s19 + $0x15] ss:$0 sm:$0xff] }
 0x8b2   : > { %v1878_v13 = vmul.f32 %v1876_v12, %v1854_v11 }
 0x8b4   : > { %v1885_v16 = vmul.f32 %v3125_v9, %v1878_v13 }
 0x8b6   : > { %v1892_v18 = vadd.f32 %v3126_v15, %v1885_v16 }
 0x8b8   : > { %v1893_v20 = vpack.c.bf16 %v1892_v18, %v1891_v17 }
 0x8ba   : > { %1972 = vmatmul.bf16.vlgmr.msrb.gmra.mxu0 %v1893_v20 }
 0x937   : > { %v1973_v28 = vpop.f32.mrf.mxu0 }
 0x938   : > { %v1974_v30 = vadd.f32 %v3127_v27, %v1973_v28 }
 0x93a   : > { %v2860_v31 = vmul.f32 -1.442695, %v1974_v30 }
 0x93c   : > { %3179 = vpow2.f32 %v2860_v31 }
 0x93f   : > { %v1975_v34 = vpop.f32.mrf.mxu0 }
 0x940   : > { %v1976_v36 = vadd.f32 %v3127_v27, %v1975_v34 }
 0x942   : > { %v3180_v47 = vpop.eup %3179  ;;  %v2861_v38 = vmul.f32 -1.442695, %v1976_v36 }
 0x943   : > { %v1984_v39 = vadd.f32 1.0, %v3180_v47 }
 0x944   : > { %3181 = vpow2.f32 %v2861_v38  ;;  %v3130_v38 = vld [vmem:[%s3518_s19 + $0x17] ss:$0 sm:$0xff]  ;;  %s3364_s19 = smov [#allocation10]  }
 0x945   : > { %3183 = vrcp.f32 %v1984_v39  ;;  %v1997_v49 = vand.u32 2147483648, %v1984_v39  ;;  %vm1991_vm12 = vweird.f32 %v1984_v39  ;;  %v1995_v50 = vand.u32 2147483647, %v1984_v39  ;;  %s2186_s6 = sshll.u32 %s3364_s19, 4  ;;  %s2187_s6 = int_to_ptr.vmem [resolvable:$true] %s2186_s6 }
 0x947   : > { %v1998_v59 = vor.u32 1.1754944e-38, %v1997_v49  ;;  %vm1996_vm15 = vcmp.eq.f32.partialorder %v1995_v50, 8.507059e+37 }
 0x94a   : > { %v3182_v40 = vpop.eup %3181 }
 0x94b   : > { %v3184_v41 = vpop.eup %3183  ;;  %v1985_v51 = vadd.f32 1.0, %v3182_v40 }
 0x94c   : > { %v1987_v42 = vmul.f32 %v3184_v41, %v1984_v39  ;;  %vm1992_vm11 = vweird.f32 %v3184_v41 }
 0x94d   : > { %3185 = vrcp.f32 %v1985_v51  ;;  %vm1993_vm13 = vmor %vm1991_vm12, %vm1992_vm11  ;;  %v2012_v52 = vand.u32 2147483648, %v1985_v51  ;;  %v2010_v56 = vand.u32 2147483647, %v1985_v51  ;;  %vm2006_vm0 = vweird.f32 %v1985_v51 }
 0x94e   : > { %v1988_v43 = vsub.f32 1.0, %v1987_v42  ;;  %v2171_v42 = vstv %s3766_s10 }
 0x94f   : > { %v2013_v19 = vor.u32 1.1754944e-38, %v2012_v52  ;;  %vm2011_vm2 = vcmp.eq.f32.partialorder %v2010_v56, 8.507059e+37 }
 0x950   : > { %v1989_v44 = vmul.f32 %v3184_v41, %v1988_v43 }
 0x952   : > { %v1990_v46 = vadd.f32 %v3184_v41, %v1989_v44 }
 0x953   : > { %v3186_v45 = vpop.eup %3185 }
 0x954   : > { %v2002_v48 = vmul.f32 %v3186_v45, %v1985_v51  ;;  %v1994_v53 = vsel %vm1993_vm13, %v3184_v41, %v1990_v46  ;;  %vm2007_vm14 = vweird.f32 %v3186_v45 }
 0x955   : > { %v1999_v58 = vsel %vm1996_vm15, %v1998_v59, %v1994_v53  ;;  %vm2008_vm1 = vmor %vm2006_vm0, %vm2007_vm14 }
 0x956   : > { %v2003_v54 = vsub.f32 1.0, %v2002_v48  ;;  %v2016_v62 = vmul.f32 %v1999_v58, %v1974_v30 }
 0x958   : > { %v2004_v55 = vmul.f32 %v3186_v45, %v2003_v54 }
 0x95a   : > { %v2005_v57 = vadd.f32 %v3186_v45, %v2004_v55  ;;  %v2168_v55 = vld [vmem:[#allocation10 + $0x8] sm:$0xff] }
 0x95c   : > { %v2009_v60 = vsel %vm2008_vm1, %v3186_v45, %v2005_v57  ;;  %v2167_v45 = vld [vmem:[#allocation10] sm:$0xff] }
 0x95d   : > { %v2014_v61 = vsel %vm2011_vm2, %v2013_v19, %v2009_v60 }
 0x95e   : > { %v2017_v21 = vmul.f32 %v2014_v61, %v1976_v36 }
 0x960   : > { %v2018_v63 = vpack.c.bf16 %v2017_v21, %v2016_v62 }
 0x962   : > { %2097 = vmatmul.bf16.vlgmr.msra.gmra.mxu1 %v2018_v63 }
 0x9df   : > { %v2098_v1 = vpop.f32.mrf.mxu1 }
 0x9e0   : > { %v2099_v2 = vadd.f32 %v3128_v0, %v2098_v1 }
 0x9e2   : > { %v2103_v3 = vmul.f32 0.5, %v2099_v2 }
 0x9e4   : > { %v2105_v4 = vadd.f32 %v2103_v3, %v3730_v33 }
 0x9e6   : > { %2107 = vadd.xlane.f32.xlu0 %v2105_v4  ;;  %v2113_v5 = vmul.f32 %v2105_v4, %v2105_v4 }
 0x9e7   : > { %v2100_v6 = vpop.f32.mrf.mxu1 }
 0x9e8   : > { %v2101_v7 = vadd.f32 %v3128_v0, %v2100_v6  ;;  %2115 = vadd.xlane.f32.xlu2 %v2113_v5 }
 0x9ea   : > { %v2104_v8 = vmul.f32 0.5, %v2101_v7 }
 0x9ec   : > { %v2106_v9 = vadd.f32 %v2104_v8, %v3736_v37 }
 0x9ee   : > { %2109 = vadd.xlane.f32.xlu1 %v2106_v9  ;;  %v2114_v10 = vmul.f32 %v2106_v9, %v2106_v9 }
 0x9f0   : > { %2117 = vadd.xlane.f32.xlu0 %v2114_v10 }
 0xa59   : > { %v2108_v11 = vpop.xlane.xlu0 %2107 }
 0xa5a   : > { %v2111_v12 = vmul.f32 0.03125, %v2108_v11 }
 0xa5b   : > { %v2116_v13 = vpop.xlane.xlu2 %2115 }
 0xa5c   : > { %v2121_v14 = vmul.f32 %v2111_v12, %v2111_v12  ;;  %v2119_v15 = vmul.f32 0.03125, %v2116_v13  ;;  %v2125_v34 = vsub.f32 %v2105_v4, %v2111_v12 }
 0xa5e   : > { %v2123_v16 = vsub.f32 %v2119_v15, %v2121_v14 }
 0xa60   : > { %v2127_v17 = vadd.f32 1e-05, %v2123_v16 }
 0xa61   : > { %v2110_v33 = vpop.xlane.xlu1 %2109 }
 0xa62   : > { %3187 = vrsqrt.f32 %v2127_v17  ;;  %v2112_v18 = vmul.f32 0.03125, %v2110_v33  ;;  %vm2135_vm4 = vweird.f32 %v2127_v17 }
 0xa63   : > { %v2118_v20 = vpop.xlane.xlu0 %2117 }
 0xa64   : > { %v2122_v22 = vmul.f32 %v2112_v18, %v2112_v18  ;;  %v2120_v23 = vmul.f32 0.03125, %v2118_v20  ;;  %v2126_v46 = vsub.f32 %v2106_v9, %v2112_v18 }
 0xa66   : > { %v2124_v24 = vsub.f32 %v2120_v23, %v2122_v22 }
 0xa68   : > { %v3188_v37 = vpop.eup %3187  ;;  %v2128_v25 = vadd.f32 1e-05, %v2124_v24 }
 0xa69   : > { %v2130_v26 = vmul.f32 %v3188_v37, %v2127_v17  ;;  %vm2136_vm3 = vweird.f32 %v3188_v37 }
 0xa6a   : > { %3189 = vrsqrt.f32 %v2128_v25  ;;  %vm2137_vm5 = vmor %vm2135_vm4, %vm2136_vm3  ;;  %vm2145_vm7 = vweird.f32 %v2128_v25 }
 0xa6b   : > { %v2131_v27 = vmul.f32 %v3188_v37, %v2130_v26 }
 0xa6d   : > { %v2132_v28 = vmul.f32 0.5, %v2131_v27 }
 0xa6f   : > { %v2133_v29 = vsub.f32 1.5, %v2132_v28 }
 0xa70   : > { %v3190_v30 = vpop.eup %3189 }
 0xa71   : > { %v2134_v31 = vmul.f32 %v3188_v37, %v2133_v29  ;;  %v2140_v32 = vmul.f32 %v3190_v30, %v2128_v25  ;;  %vm2146_vm6 = vweird.f32 %v3190_v30 }
 0xa72   : > { %vm2147_vm8 = vmor %vm2145_vm7, %vm2146_vm6 }
 0xa73   : > { %v2138_v36 = vsel %vm2137_vm5, %v3188_v37, %v2134_v31  ;;  %v2141_v47 = vmul.f32 %v3190_v30, %v2140_v32 }
 0xa74   : > { %v2149_v39 = vmul.f32 %v2138_v36, %v2125_v34 }
 0xa75   : > { %v2142_v40 = vmul.f32 0.5, %v2141_v47 }
 0xa76   : > { %v2156_v41 = vmul.f32 %v3129_v35, %v2149_v39 }
 0xa77   : > { %v2143_v51 = vsub.f32 1.5, %v2142_v40 }
 0xa78   : > { %v2163_v43 = vadd.f32 %v3130_v38, %v2156_v41 }
 0xa79   : > { %v2144_v44 = vmul.f32 %v3190_v30, %v2143_v51 }
 0xa7a   : > { %2165 = vst [vmem:[#allocation2] sm:$0xff] %v2163_v43  ;;  %v2172_v48 = vmul.f32 %v2171_v42, %v2163_v43 }
 0xa7b   : > { %v2148_v49 = vsel %vm2147_vm8, %v3190_v30, %v2144_v44 }
 0xa7c   : > { %v2150_v50 = vmul.f32 %v2148_v49, %v2126_v46  ;;  %v2174_v54 = vadd.f32 %v2172_v48, %v2167_v45 }
 0xa7e   : > { %v2157_v52 = vmul.f32 %v3129_v35, %v2150_v50  ;;  %2176 = vst [vmem:[#allocation10] sm:$0xff] %v2174_v54 }
 0xa80   : > { %v2164_v53 = vadd.f32 %v3130_v38, %v2157_v52 }
 0xa82   : > { %2166 = vst [vmem:[#allocation2 + $0x8] sm:$0xff] %v2164_v53  ;;  %v2173_v56 = vmul.f32 %v2171_v42, %v2164_v53 }
 0xa84   : > { %v2175_v59 = vadd.f32 %v2173_v56, %v2168_v55 }
 0xa86   : > { %2177 = vst [vmem:[#allocation10 + $0x8] sm:$0xff] %v2175_v59 }
 0xa87   : > { %3025 = dma.vmem_to_hbm [thread:$0]  (%p3042_p2), %s2187_s6, 256, %s2189_s22, [#allocation5], %s3365_s21, %s3365_s21, %s3366_s25  }
 0xa88   : > { %3331 = dma.done.wait (%p3042_p2), [#allocation5], 256  }
 0xa89   : > { %3333 = vsyncadd (%p3042_p2), [#allocation5], 4294967040 }
 0xa8a PF: > { %s3822_s14 = sld [smem:[#allocation15_spill]]  ;;  %s3825_s27 = smov %s3340_s28 }
 0xa8b   : > { %s3823_s26 = sld [smem:[#allocation17_spill]]  ;;  %s3826_s28 = smov %s3344_s29 }
 0xa8c   : > { %s3824_s24 = sld [smem:[#allocation16_spill]]  ;;  %s3828_s30 = smov %s3352_s9 }
 0xa90   : > { %s26_s10 = sadd.s32 1, %s3822_s14  }
 0xa91   : > { %p23_p3 = scmp.ge.s32.totalorder %s26_s10, 4   ;;  %s3827_s29 = smov %s3823_s26 }
 0xa92   : > { %s3829_s9 = smov %s3824_s24 }
 0xa93   :  { %25 = sbr.rel (!%p23_p3) target bundleno = 12 (0xc), region = 155 }
 0xa98   :  { %2205 = vsyncpa [#allocation4], 1 }
 0xa99   :  { %2207 = vsyncpa [#allocation4 + $0x1], 1 }
 0xa9a   :  { %2208 = vsyncpa [#allocation9], 1 }
 0xa9b   :  { %2210 = vsyncpa [#allocation9 + $0x1], 1 }
 0xa9c   :  { %2211 = vsyncpa [#allocation5], 1 }
 0xa9d   :  { %2213 = vsyncpa [#allocation5 + $0x1], 1 }
 0xa9e   :  { %2214 = vsyncpa [#allocation6], 1 }
 0xa9f   :  { %2216 = vsyncpa [#allocation6 + $0x1], 1 }

</bundles_post_ra>
